<compile_context>
chip_gen: v7x
topology: tpu7x:2x2x1
jax: 0.10.0
libtpu: 0.0.40
codegen_flags: <defaults>
</compile_context>

<pallas_src>
import functools

import jax
import jax.numpy as jnp
from jax.experimental import pallas as pl
from jax.experimental.pallas import tpu as pltpu


def _leaky(x):
    # torch.nn.LeakyReLU(negative_slope=0.1)
    return jnp.where(x >= 0, x, 0.1 * x)


def _round_up(x, m):
    return (x + m - 1) // m * m


def pointconv2d_kernel(feat_ref, w1x_ref, w1y_ref, b1_ref, w2_ref, b2_ref,
                       wl_ref, bl_ref, out_ref):
    # Ref shapes (one grid step = one (batch, N-tile)):
    #   feat_ref: [1, K, CpP, TN]  (channels 0,1 of CpP are the 2D xy offsets)
    #   w1x/w1y/b1: [H, 1]   w2: [H, H]   b2: [H, 1]     (WeightNet, H = 9)
    #   wl: [OUT, H*CpP]     bl: [OUT, 1]                (final Linear, padded)
    #   out_ref: [1, OUT, TN]
    K = feat_ref.shape[1]
    CpP = feat_ref.shape[2]
    TN = feat_ref.shape[3]
    H = w2_ref.shape[0]

    w1x = w1x_ref[...]          # [H, 1]
    w1y = w1y_ref[...]          # [H, 1]
    b1 = b1_ref[...]            # [H, 1]
    w2 = w2_ref[...]            # [H, H]
    b2 = b2_ref[...]            # [H, 1]

    m_acc = jnp.zeros((H, CpP, TN), jnp.float32)
    for k in range(K):                                   # K == 9, unrolled
        f_k = feat_ref[0, k, :, :]                       # [CpP, TN], lane-dense in N
        # WeightNet layer 1 (2 -> H): VPU broadcast FMAs.
        h_k = _leaky(w1x * f_k[0:1, :] + w1y * f_k[1:2, :] + b1)        # [H, TN]
        # WeightNet layer 2 (H -> H): small MXU matmul.
        w_k = _leaky(jnp.dot(w2, h_k,
                             preferred_element_type=jnp.float32) + b2)  # [H, TN]
        # Weighted features: M[a, c, n] += w_k[a, n] * f_k[c, n]
        m_acc = m_acc + w_k[:, None, :] * f_k[None, :, :]               # [H, CpP, TN]

    # Fused Linear 9*(C+2) -> OUT: one MXU matmul over the flattened (a, c) axis.
    m_flat = m_acc.reshape(H * CpP, TN)                  # tile-aligned (CpP % 8 == 0)
    out = jnp.dot(wl_ref[...], m_flat,
                  preferred_element_type=jnp.float32) + bl_ref[...]     # [OUT, TN]
    out_ref[0] = _leaky(out)


def pointconv2d_forward(xy_offset, knn_features, params, *, block_n=512):
    """xy_offset [B,2,N,K], knn_features [B,C,N,K] -> [B, OUT, N] (float32)."""
    W1, b1, W2, b2, Wl, bl = params
    B, _, N, K = xy_offset.shape
    C = knn_features.shape[1]
    Cp2 = C + 2
    H = W1.shape[0]            # 9 (WeightNet hidden width)
    OUT = Wl.shape[0]
    CpP = _round_up(Cp2, 8)    # pad channels so sublane tiles are full (8-aligned)

    TN = min(_round_up(block_n, 128), _round_up(N, 128))   # lane tile (multiple of 128)
    Npad = _round_up(N, TN)
    n_tiles = Npad // TN

    # ----- glue (plain JAX): concat + layout transpose (N last) + padding -----
    feats = jnp.concatenate([xy_offset, knn_features], axis=1)          # [B, Cp2, N, K]
    feats = jnp.transpose(feats, (0, 3, 1, 2)).astype(jnp.float32)      # [B, K, Cp2, N]
    feats = jnp.pad(feats, ((0, 0), (0, 0), (0, CpP - Cp2), (0, Npad - N)))

    # ----- parameter reshapes -----
    w1x = W1[:, 0:1].astype(jnp.float32)                                # [H, 1]
    w1y = W1[:, 1:2].astype(jnp.float32)                                # [H, 1]
    b1c = b1.reshape(H, 1).astype(jnp.float32)
    w2m = W2.astype(jnp.float32)                                        # [H, H]
    b2c = b2.reshape(H, 1).astype(jnp.float32)
    # Linear weight [OUT, H*Cp2] -> [OUT, H, Cp2] -> pad Cp2->CpP -> [OUT, H*CpP]
    # (matches the PyTorch row-major .view() flatten; padded columns are zero).
    wl3 = Wl.reshape(OUT, H, Cp2).astype(jnp.float32)
    wl3 = jnp.pad(wl3, ((0, 0), (0, 0), (0, CpP - Cp2)))
    wlp = wl3.reshape(OUT, H * CpP)
    blc = bl.reshape(OUT, 1).astype(jnp.float32)

    out_pad = pl.pallas_call(
        pointconv2d_kernel,
        out_shape=jax.ShapeDtypeStruct((B, OUT, Npad), jnp.float32),
        grid_spec=pltpu.PrefetchScalarGridSpec(
            num_scalar_prefetch=0,
            grid=(B, n_tiles),
            in_specs=[
                pl.BlockSpec((1, K, CpP, TN), lambda b, n: (b, 0, 0, n)),
                pl.BlockSpec((H, 1), lambda b, n: (0, 0)),
                pl.BlockSpec((H, 1), lambda b, n: (0, 0)),
                pl.BlockSpec((H, 1), lambda b, n: (0, 0)),
                pl.BlockSpec((H, H), lambda b, n: (0, 0)),
                pl.BlockSpec((H, 1), lambda b, n: (0, 0)),
                pl.BlockSpec((OUT, H * CpP), lambda b, n: (0, 0)),
                pl.BlockSpec((OUT, 1), lambda b, n: (0, 0)),
            ],
            out_specs=pl.BlockSpec((1, OUT, TN), lambda b, n: (b, 0, n)),
        ),
        compiler_params=pltpu.CompilerParams(
            dimension_semantics=("parallel", "parallel")),
    )(feats, w1x, w1y, b1c, w2m, b2c, wlp, blc)

    return out_pad[:, :, :N]                             # [B, OUT, N], already N-last


def pointconv2d_reference(xy_offset, knn_features, params):
    """Pure-JAX reference mirroring the PyTorch forward (for verification)."""
    W1, b1, W2, b2, Wl, bl = params
    B, _, N, K = xy_offset.shape
    feats = jnp.concatenate([xy_offset, knn_features], axis=1)          # [B, Cp2, N, K]
    feats_cl = feats.transpose(0, 2, 3, 1)                              # [B, N, K, Cp2]
    h = _leaky(jnp.einsum('oc,bcnk->bonk', W1, xy_offset) + b1[None, :, None, None])
    w = _leaky(jnp.einsum('oa,bank->bonk', W2, h) + b2[None, :, None, None])
    w_t = w.transpose(0, 2, 1, 3)                                       # [B, N, 9, K]
    M = jnp.matmul(w_t, feats_cl)                                       # [B, N, 9, Cp2]
    v = M.reshape(B, N, -1)
    out = _leaky(v @ Wl.T + bl)                                         # [B, N, OUT]
    return out.transpose(0, 2, 1)                                       # [B, OUT, N]


if __name__ == "__main__":
    # Small deterministic problem (N large enough to exercise N-tiling with TN=128).
    B, C_IN, N, K = 2, 4, 256, 9
    OUT_CH, H = 32, 9

    key = jax.random.PRNGKey(0)
    keys = jax.random.split(key, 8)

    xy_offset = jax.random.normal(keys[0], (B, 2, N, K), jnp.float32)
    knn_features = jax.random.normal(keys[1], (B, C_IN, N, K), jnp.float32)

    # Deterministic synthetic parameters (WeightNet(2,[9,9]) = two 1x1 convs
    # with bias + leaky_relu; Linear(9*(C_in+2) -> OUT); norm=None -> Identity).
    W1 = 0.2 * jax.random.normal(keys[2], (H, 2), jnp.float32)
    b1 = 0.1 * jax.random.normal(keys[3], (H,), jnp.float32)
    W2 = 0.2 * jax.random.normal(keys[4], (H, H), jnp.float32)
    b2 = 0.1 * jax.random.normal(keys[5], (H,), jnp.float32)
    Wl = 0.1 * jax.random.normal(keys[6], (OUT_CH, H * (C_IN + 2)), jnp.float32)
    bl = 0.1 * jax.random.normal(keys[7], (OUT_CH,), jnp.float32)
    params = (W1, b1, W2, b2, Wl, bl)

    fwd = jax.jit(functools.partial(pointconv2d_forward, block_n=128))
    out = fwd(xy_offset, knn_features, params)
    out = jax.block_until_ready(out)

    ref = pointconv2d_reference(xy_offset, knn_features, params)
    assert out.shape == (B, OUT_CH, N), out.shape
    max_err = float(jnp.max(jnp.abs(out - ref)))
    assert max_err < 1e-4, f"mismatch vs reference: {max_err}"

    print("KERNEL_OK")
</pallas_src>

<mosaic_0001>
module attributes {stable_mosaic.version = 11 : i64} {
  func.func @pointconv2d_kernel(%arg0: i32, %arg1: i32, %arg2: memref<1x9x8x128xf32, #tpu.memory_space<vmem>>, %arg3: memref<9x1xf32, #tpu.memory_space<vmem>>, %arg4: memref<9x1xf32, #tpu.memory_space<vmem>>, %arg5: memref<9x1xf32, #tpu.memory_space<vmem>>, %arg6: memref<9x9xf32, #tpu.memory_space<vmem>>, %arg7: memref<9x1xf32, #tpu.memory_space<vmem>>, %arg8: memref<32x72xf32, #tpu.memory_space<vmem>>, %arg9: memref<32x1xf32, #tpu.memory_space<vmem>>, %arg10: memref<1x32x128xf32, #tpu.memory_space<vmem>>) attributes {dimension_semantics = [#tpu.dimension_semantics<parallel>, #tpu.dimension_semantics<parallel>], iteration_bounds = array<i64: 2, 2>, scalar_prefetch = 0 : i64, scratch_operands = 0 : i64, tpu.core_type = #tpu.core_type<tc>, window_params = [{transform_indices = @transform_0, window_bounds = array<i64: 1, 9, 8, 128>}, {pipeline_mode = #tpu.pipeline_mode<synchronous>, transform_indices = @transform_1, window_bounds = array<i64: 9, 1>}, {pipeline_mode = #tpu.pipeline_mode<synchronous>, transform_indices = @transform_2, window_bounds = array<i64: 9, 1>}, {pipeline_mode = #tpu.pipeline_mode<synchronous>, transform_indices = @transform_3, window_bounds = array<i64: 9, 1>}, {pipeline_mode = #tpu.pipeline_mode<synchronous>, transform_indices = @transform_4, window_bounds = array<i64: 9, 9>}, {pipeline_mode = #tpu.pipeline_mode<synchronous>, transform_indices = @transform_5, window_bounds = array<i64: 9, 1>}, {pipeline_mode = #tpu.pipeline_mode<synchronous>, transform_indices = @transform_6, window_bounds = array<i64: 32, 72>}, {pipeline_mode = #tpu.pipeline_mode<synchronous>, transform_indices = @transform_7, window_bounds = array<i64: 32, 1>}, {transform_indices = @transform_8, window_bounds = array<i64: 1, 32, 128>}]} {
    %c0 = arith.constant 0 : index
    %c0_0 = arith.constant 0 : index
    %0 = vector.load %arg3[%c0, %c0_0] : memref<9x1xf32, #tpu.memory_space<vmem>>, vector<9x1xf32>
    %c0_1 = arith.constant 0 : index
    %c0_2 = arith.constant 0 : index
    %1 = vector.load %arg4[%c0_1, %c0_2] : memref<9x1xf32, #tpu.memory_space<vmem>>, vector<9x1xf32>
    %c0_3 = arith.constant 0 : index
    %c0_4 = arith.constant 0 : index
    %2 = vector.load %arg5[%c0_3, %c0_4] : memref<9x1xf32, #tpu.memory_space<vmem>>, vector<9x1xf32>
    %c0_5 = arith.constant 0 : index
    %c0_6 = arith.constant 0 : index
    %3 = vector.load %arg6[%c0_5, %c0_6] : memref<9x9xf32, #tpu.memory_space<vmem>>, vector<9x9xf32>
    %c0_7 = arith.constant 0 : index
    %c0_8 = arith.constant 0 : index
    %4 = vector.load %arg7[%c0_7, %c0_8] : memref<9x1xf32, #tpu.memory_space<vmem>>, vector<9x1xf32>
    %cst = arith.constant 0.000000e+00 : f32
    %5 = vector.broadcast %cst : f32 to vector<9x8x128xf32>
    %c0_9 = arith.constant 0 : index
    %c0_10 = arith.constant 0 : index
    %c0_11 = arith.constant 0 : index
    %c0_12 = arith.constant 0 : index
    %6 = vector.load %arg2[%c0_9, %c0_10, %c0_11, %c0_12] : memref<1x9x8x128xf32, #tpu.memory_space<vmem>>, vector<1x1x8x128xf32>
    %7 = vector.shape_cast %6 : vector<1x1x8x128xf32> to vector<8x128xf32>
    %8 = vector.extract_strided_slice %7 {offsets = [0, 0], sizes = [1, 128], strides = [1, 1]} : vector<8x128xf32> to vector<1x128xf32>
    %9 = vector.broadcast %0 : vector<9x1xf32> to vector<9x128xf32>
    %10 = vector.broadcast %8 : vector<1x128xf32> to vector<9x128xf32>
    %11 = arith.mulf %9, %10 : vector<9x128xf32>
    %12 = vector.extract_strided_slice %7 {offsets = [1, 0], sizes = [1, 128], strides = [1, 1]} : vector<8x128xf32> to vector<1x128xf32>
    %13 = vector.broadcast %1 : vector<9x1xf32> to vector<9x128xf32>
    %14 = vector.broadcast %12 : vector<1x128xf32> to vector<9x128xf32>
    %15 = arith.mulf %13, %14 : vector<9x128xf32>
    %16 = arith.addf %11, %15 : vector<9x128xf32>
    %17 = vector.broadcast %2 : vector<9x1xf32> to vector<9x128xf32>
    %18 = arith.addf %16, %17 : vector<9x128xf32>
    %cst_13 = arith.constant 0.000000e+00 : f32
    %19 = vector.broadcast %cst_13 : f32 to vector<9x128xf32>
    %20 = arith.cmpf oge, %18, %19 : vector<9x128xf32>
    %cst_14 = arith.constant 1.000000e-01 : f32
    %21 = vector.broadcast %cst_14 : f32 to vector<9x128xf32>
    %22 = arith.mulf %21, %18 : vector<9x128xf32>
    %23 = arith.select %20, %18, %22 : vector<9x128xi1>, vector<9x128xf32>
    %cst_15 = arith.constant dense<0.000000e+00> : vector<9x128xf32>
    %24 = tpu.matmul %3, %23, %cst_15 {dimension_numbers = #tpu.dot_dimension_numbers<[1], [0], [0], [1], [0, 0, 1, 1], [], []>} : vector<9x9xf32>, vector<9x128xf32>, vector<9x128xf32> -> vector<9x128xf32>
    %25 = vector.broadcast %4 : vector<9x1xf32> to vector<9x128xf32>
    %26 = arith.addf %24, %25 : vector<9x128xf32>
    %cst_16 = arith.constant 0.000000e+00 : f32
    %27 = vector.broadcast %cst_16 : f32 to vector<9x128xf32>
    %28 = arith.cmpf oge, %26, %27 : vector<9x128xf32>
    %cst_17 = arith.constant 1.000000e-01 : f32
    %29 = vector.broadcast %cst_17 : f32 to vector<9x128xf32>
    %30 = arith.mulf %29, %26 : vector<9x128xf32>
    %31 = arith.select %28, %26, %30 : vector<9x128xi1>, vector<9x128xf32>
    %32 = vector.shape_cast %31 : vector<9x128xf32> to vector<9x1x128xf32>
    %33 = vector.shape_cast %7 : vector<8x128xf32> to vector<1x8x128xf32>
    %34 = vector.broadcast %32 : vector<9x1x128xf32> to vector<9x8x128xf32>
    %35 = vector.broadcast %33 : vector<1x8x128xf32> to vector<9x8x128xf32>
    %36 = arith.mulf %34, %35 : vector<9x8x128xf32>
    %37 = arith.addf %5, %36 : vector<9x8x128xf32>
    %c0_18 = arith.constant 0 : index
    %c1 = arith.constant 1 : index
    %c0_19 = arith.constant 0 : index
    %c0_20 = arith.constant 0 : index
    %38 = vector.load %arg2[%c0_18, %c1, %c0_19, %c0_20] : memref<1x9x8x128xf32, #tpu.memory_space<vmem>>, vector<1x1x8x128xf32>
    %39 = vector.shape_cast %38 : vector<1x1x8x128xf32> to vector<8x128xf32>
    %40 = vector.extract_strided_slice %39 {offsets = [0, 0], sizes = [1, 128], strides = [1, 1]} : vector<8x128xf32> to vector<1x128xf32>
    %41 = vector.broadcast %0 : vector<9x1xf32> to vector<9x128xf32>
    %42 = vector.broadcast %40 : vector<1x128xf32> to vector<9x128xf32>
    %43 = arith.mulf %41, %42 : vector<9x128xf32>
    %44 = vector.extract_strided_slice %39 {offsets = [1, 0], sizes = [1, 128], strides = [1, 1]} : vector<8x128xf32> to vector<1x128xf32>
    %45 = vector.broadcast %1 : vector<9x1xf32> to vector<9x128xf32>
    %46 = vector.broadcast %44 : vector<1x128xf32> to vector<9x128xf32>
    %47 = arith.mulf %45, %46 : vector<9x128xf32>
    %48 = arith.addf %43, %47 : vector<9x128xf32>
    %49 = vector.broadcast %2 : vector<9x1xf32> to vector<9x128xf32>
    %50 = arith.addf %48, %49 : vector<9x128xf32>
    %cst_21 = arith.constant 0.000000e+00 : f32
    %51 = vector.broadcast %cst_21 : f32 to vector<9x128xf32>
    %52 = arith.cmpf oge, %50, %51 : vector<9x128xf32>
    %cst_22 = arith.constant 1.000000e-01 : f32
    %53 = vector.broadcast %cst_22 : f32 to vector<9x128xf32>
    %54 = arith.mulf %53, %50 : vector<9x128xf32>
    %55 = arith.select %52, %50, %54 : vector<9x128xi1>, vector<9x128xf32>
    %cst_23 = arith.constant dense<0.000000e+00> : vector<9x128xf32>
    %56 = tpu.matmul %3, %55, %cst_23 {dimension_numbers = #tpu.dot_dimension_numbers<[1], [0], [0], [1], [0, 0, 1, 1], [], []>} : vector<9x9xf32>, vector<9x128xf32>, vector<9x128xf32> -> vector<9x128xf32>
    %57 = vector.broadcast %4 : vector<9x1xf32> to vector<9x128xf32>
    %58 = arith.addf %56, %57 : vector<9x128xf32>
    %cst_24 = arith.constant 0.000000e+00 : f32
    %59 = vector.broadcast %cst_24 : f32 to vector<9x128xf32>
    %60 = arith.cmpf oge, %58, %59 : vector<9x128xf32>
    %cst_25 = arith.constant 1.000000e-01 : f32
    %61 = vector.broadcast %cst_25 : f32 to vector<9x128xf32>
    %62 = arith.mulf %61, %58 : vector<9x128xf32>
    %63 = arith.select %60, %58, %62 : vector<9x128xi1>, vector<9x128xf32>
    %64 = vector.shape_cast %63 : vector<9x128xf32> to vector<9x1x128xf32>
    %65 = vector.shape_cast %39 : vector<8x128xf32> to vector<1x8x128xf32>
    %66 = vector.broadcast %64 : vector<9x1x128xf32> to vector<9x8x128xf32>
    %67 = vector.broadcast %65 : vector<1x8x128xf32> to vector<9x8x128xf32>
    %68 = arith.mulf %66, %67 : vector<9x8x128xf32>
    %69 = arith.addf %37, %68 : vector<9x8x128xf32>
    %c0_26 = arith.constant 0 : index
    %c2 = arith.constant 2 : index
    %c0_27 = arith.constant 0 : index
    %c0_28 = arith.constant 0 : index
    %70 = vector.load %arg2[%c0_26, %c2, %c0_27, %c0_28] : memref<1x9x8x128xf32, #tpu.memory_space<vmem>>, vector<1x1x8x128xf32>
    %71 = vector.shape_cast %70 : vector<1x1x8x128xf32> to vector<8x128xf32>
    %72 = vector.extract_strided_slice %71 {offsets = [0, 0], sizes = [1, 128], strides = [1, 1]} : vector<8x128xf32> to vector<1x128xf32>
    %73 = vector.broadcast %0 : vector<9x1xf32> to vector<9x128xf32>
    %74 = vector.broadcast %72 : vector<1x128xf32> to vector<9x128xf32>
    %75 = arith.mulf %73, %74 : vector<9x128xf32>
    %76 = vector.extract_strided_slice %71 {offsets = [1, 0], sizes = [1, 128], strides = [1, 1]} : vector<8x128xf32> to vector<1x128xf32>
    %77 = vector.broadcast %1 : vector<9x1xf32> to vector<9x128xf32>
    %78 = vector.broadcast %76 : vector<1x128xf32> to vector<9x128xf32>
    %79 = arith.mulf %77, %78 : vector<9x128xf32>
    %80 = arith.addf %75, %79 : vector<9x128xf32>
    %81 = vector.broadcast %2 : vector<9x1xf32> to vector<9x128xf32>
    %82 = arith.addf %80, %81 : vector<9x128xf32>
    %cst_29 = arith.constant 0.000000e+00 : f32
    %83 = vector.broadcast %cst_29 : f32 to vector<9x128xf32>
    %84 = arith.cmpf oge, %82, %83 : vector<9x128xf32>
    %cst_30 = arith.constant 1.000000e-01 : f32
    %85 = vector.broadcast %cst_30 : f32 to vector<9x128xf32>
    %86 = arith.mulf %85, %82 : vector<9x128xf32>
    %87 = arith.select %84, %82, %86 : vector<9x128xi1>, vector<9x128xf32>
    %cst_31 = arith.constant dense<0.000000e+00> : vector<9x128xf32>
    %88 = tpu.matmul %3, %87, %cst_31 {dimension_numbers = #tpu.dot_dimension_numbers<[1], [0], [0], [1], [0, 0, 1, 1], [], []>} : vector<9x9xf32>, vector<9x128xf32>, vector<9x128xf32> -> vector<9x128xf32>
    %89 = vector.broadcast %4 : vector<9x1xf32> to vector<9x128xf32>
    %90 = arith.addf %88, %89 : vector<9x128xf32>
    %cst_32 = arith.constant 0.000000e+00 : f32
    %91 = vector.broadcast %cst_32 : f32 to vector<9x128xf32>
    %92 = arith.cmpf oge, %90, %91 : vector<9x128xf32>
    %cst_33 = arith.constant 1.000000e-01 : f32
    %93 = vector.broadcast %cst_33 : f32 to vector<9x128xf32>
    %94 = arith.mulf %93, %90 : vector<9x128xf32>
    %95 = arith.select %92, %90, %94 : vector<9x128xi1>, vector<9x128xf32>
    %96 = vector.shape_cast %95 : vector<9x128xf32> to vector<9x1x128xf32>
    %97 = vector.shape_cast %71 : vector<8x128xf32> to vector<1x8x128xf32>
    %98 = vector.broadcast %96 : vector<9x1x128xf32> to vector<9x8x128xf32>
    %99 = vector.broadcast %97 : vector<1x8x128xf32> to vector<9x8x128xf32>
    %100 = arith.mulf %98, %99 : vector<9x8x128xf32>
    %101 = arith.addf %69, %100 : vector<9x8x128xf32>
    %c0_34 = arith.constant 0 : index
    %c3 = arith.constant 3 : index
    %c0_35 = arith.constant 0 : index
    %c0_36 = arith.constant 0 : index
    %102 = vector.load %arg2[%c0_34, %c3, %c0_35, %c0_36] : memref<1x9x8x128xf32, #tpu.memory_space<vmem>>, vector<1x1x8x128xf32>
    %103 = vector.shape_cast %102 : vector<1x1x8x128xf32> to vector<8x128xf32>
    %104 = vector.extract_strided_slice %103 {offsets = [0, 0], sizes = [1, 128], strides = [1, 1]} : vector<8x128xf32> to vector<1x128xf32>
    %105 = vector.broadcast %0 : vector<9x1xf32> to vector<9x128xf32>
    %106 = vector.broadcast %104 : vector<1x128xf32> to vector<9x128xf32>
    %107 = arith.mulf %105, %106 : vector<9x128xf32>
    %108 = vector.extract_strided_slice %103 {offsets = [1, 0], sizes = [1, 128], strides = [1, 1]} : vector<8x128xf32> to vector<1x128xf32>
    %109 = vector.broadcast %1 : vector<9x1xf32> to vector<9x128xf32>
    %110 = vector.broadcast %108 : vector<1x128xf32> to vector<9x128xf32>
    %111 = arith.mulf %109, %110 : vector<9x128xf32>
    %112 = arith.addf %107, %111 : vector<9x128xf32>
    %113 = vector.broadcast %2 : vector<9x1xf32> to vector<9x128xf32>
    %114 = arith.addf %112, %113 : vector<9x128xf32>
    %cst_37 = arith.constant 0.000000e+00 : f32
    %115 = vector.broadcast %cst_37 : f32 to vector<9x128xf32>
    %116 = arith.cmpf oge, %114, %115 : vector<9x128xf32>
    %cst_38 = arith.constant 1.000000e-01 : f32
    %117 = vector.broadcast %cst_38 : f32 to vector<9x128xf32>
    %118 = arith.mulf %117, %114 : vector<9x128xf32>
    %119 = arith.select %116, %114, %118 : vector<9x128xi1>, vector<9x128xf32>
    %cst_39 = arith.constant dense<0.000000e+00> : vector<9x128xf32>
    %120 = tpu.matmul %3, %119, %cst_39 {dimension_numbers = #tpu.dot_dimension_numbers<[1], [0], [0], [1], [0, 0, 1, 1], [], []>} : vector<9x9xf32>, vector<9x128xf32>, vector<9x128xf32> -> vector<9x128xf32>
    %121 = vector.broadcast %4 : vector<9x1xf32> to vector<9x128xf32>
    %122 = arith.addf %120, %121 : vector<9x128xf32>
    %cst_40 = arith.constant 0.000000e+00 : f32
    %123 = vector.broadcast %cst_40 : f32 to vector<9x128xf32>
    %124 = arith.cmpf oge, %122, %123 : vector<9x128xf32>
    %cst_41 = arith.constant 1.000000e-01 : f32
    %125 = vector.broadcast %cst_41 : f32 to vector<9x128xf32>
    %126 = arith.mulf %125, %122 : vector<9x128xf32>
    %127 = arith.select %124, %122, %126 : vector<9x128xi1>, vector<9x128xf32>
    %128 = vector.shape_cast %127 : vector<9x128xf32> to vector<9x1x128xf32>
    %129 = vector.shape_cast %103 : vector<8x128xf32> to vector<1x8x128xf32>
    %130 = vector.broadcast %128 : vector<9x1x128xf32> to vector<9x8x128xf32>
    %131 = vector.broadcast %129 : vector<1x8x128xf32> to vector<9x8x128xf32>
    %132 = arith.mulf %130, %131 : vector<9x8x128xf32>
    %133 = arith.addf %101, %132 : vector<9x8x128xf32>
    %c0_42 = arith.constant 0 : index
    %c4 = arith.constant 4 : index
    %c0_43 = arith.constant 0 : index
    %c0_44 = arith.constant 0 : index
    %134 = vector.load %arg2[%c0_42, %c4, %c0_43, %c0_44] : memref<1x9x8x128xf32, #tpu.memory_space<vmem>>, vector<1x1x8x128xf32>
    %135 = vector.shape_cast %134 : vector<1x1x8x128xf32> to vector<8x128xf32>
    %136 = vector.extract_strided_slice %135 {offsets = [0, 0], sizes = [1, 128], strides = [1, 1]} : vector<8x128xf32> to vector<1x128xf32>
    %137 = vector.broadcast %0 : vector<9x1xf32> to vector<9x128xf32>
    %138 = vector.broadcast %136 : vector<1x128xf32> to vector<9x128xf32>
    %139 = arith.mulf %137, %138 : vector<9x128xf32>
    %140 = vector.extract_strided_slice %135 {offsets = [1, 0], sizes = [1, 128], strides = [1, 1]} : vector<8x128xf32> to vector<1x128xf32>
    %141 = vector.broadcast %1 : vector<9x1xf32> to vector<9x128xf32>
    %142 = vector.broadcast %140 : vector<1x128xf32> to vector<9x128xf32>
    %143 = arith.mulf %141, %142 : vector<9x128xf32>
    %144 = arith.addf %139, %143 : vector<9x128xf32>
    %145 = vector.broadcast %2 : vector<9x1xf32> to vector<9x128xf32>
    %146 = arith.addf %144, %145 : vector<9x128xf32>
    %cst_45 = arith.constant 0.000000e+00 : f32
    %147 = vector.broadcast %cst_45 : f32 to vector<9x128xf32>
    %148 = arith.cmpf oge, %146, %147 : vector<9x128xf32>
    %cst_46 = arith.constant 1.000000e-01 : f32
    %149 = vector.broadcast %cst_46 : f32 to vector<9x128xf32>
    %150 = arith.mulf %149, %146 : vector<9x128xf32>
    %151 = arith.select %148, %146, %150 : vector<9x128xi1>, vector<9x128xf32>
    %cst_47 = arith.constant dense<0.000000e+00> : vector<9x128xf32>
    %152 = tpu.matmul %3, %151, %cst_47 {dimension_numbers = #tpu.dot_dimension_numbers<[1], [0], [0], [1], [0, 0, 1, 1], [], []>} : vector<9x9xf32>, vector<9x128xf32>, vector<9x128xf32> -> vector<9x128xf32>
    %153 = vector.broadcast %4 : vector<9x1xf32> to vector<9x128xf32>
    %154 = arith.addf %152, %153 : vector<9x128xf32>
    %cst_48 = arith.constant 0.000000e+00 : f32
    %155 = vector.broadcast %cst_48 : f32 to vector<9x128xf32>
    %156 = arith.cmpf oge, %154, %155 : vector<9x128xf32>
    %cst_49 = arith.constant 1.000000e-01 : f32
    %157 = vector.broadcast %cst_49 : f32 to vector<9x128xf32>
    %158 = arith.mulf %157, %154 : vector<9x128xf32>
    %159 = arith.select %156, %154, %158 : vector<9x128xi1>, vector<9x128xf32>
    %160 = vector.shape_cast %159 : vector<9x128xf32> to vector<9x1x128xf32>
    %161 = vector.shape_cast %135 : vector<8x128xf32> to vector<1x8x128xf32>
    %162 = vector.broadcast %160 : vector<9x1x128xf32> to vector<9x8x128xf32>
    %163 = vector.broadcast %161 : vector<1x8x128xf32> to vector<9x8x128xf32>
    %164 = arith.mulf %162, %163 : vector<9x8x128xf32>
    %165 = arith.addf %133, %164 : vector<9x8x128xf32>
    %c0_50 = arith.constant 0 : index
    %c5 = arith.constant 5 : index
    %c0_51 = arith.constant 0 : index
    %c0_52 = arith.constant 0 : index
    %166 = vector.load %arg2[%c0_50, %c5, %c0_51, %c0_52] : memref<1x9x8x128xf32, #tpu.memory_space<vmem>>, vector<1x1x8x128xf32>
    %167 = vector.shape_cast %166 : vector<1x1x8x128xf32> to vector<8x128xf32>
    %168 = vector.extract_strided_slice %167 {offsets = [0, 0], sizes = [1, 128], strides = [1, 1]} : vector<8x128xf32> to vector<1x128xf32>
    %169 = vector.broadcast %0 : vector<9x1xf32> to vector<9x128xf32>
    %170 = vector.broadcast %168 : vector<1x128xf32> to vector<9x128xf32>
    %171 = arith.mulf %169, %170 : vector<9x128xf32>
    %172 = vector.extract_strided_slice %167 {offsets = [1, 0], sizes = [1, 128], strides = [1, 1]} : vector<8x128xf32> to vector<1x128xf32>
    %173 = vector.broadcast %1 : vector<9x1xf32> to vector<9x128xf32>
    %174 = vector.broadcast %172 : vector<1x128xf32> to vector<9x128xf32>
    %175 = arith.mulf %173, %174 : vector<9x128xf32>
    %176 = arith.addf %171, %175 : vector<9x128xf32>
    %177 = vector.broadcast %2 : vector<9x1xf32> to vector<9x128xf32>
    %178 = arith.addf %176, %177 : vector<9x128xf32>
    %cst_53 = arith.constant 0.000000e+00 : f32
    %179 = vector.broadcast %cst_53 : f32 to vector<9x128xf32>
    %180 = arith.cmpf oge, %178, %179 : vector<9x128xf32>
    %cst_54 = arith.constant 1.000000e-01 : f32
    %181 = vector.broadcast %cst_54 : f32 to vector<9x128xf32>
    %182 = arith.mulf %181, %178 : vector<9x128xf32>
    %183 = arith.select %180, %178, %182 : vector<9x128xi1>, vector<9x128xf32>
    %cst_55 = arith.constant dense<0.000000e+00> : vector<9x128xf32>
    %184 = tpu.matmul %3, %183, %cst_55 {dimension_numbers = #tpu.dot_dimension_numbers<[1], [0], [0], [1], [0, 0, 1, 1], [], []>} : vector<9x9xf32>, vector<9x128xf32>, vector<9x128xf32> -> vector<9x128xf32>
    %185 = vector.broadcast %4 : vector<9x1xf32> to vector<9x128xf32>
    %186 = arith.addf %184, %185 : vector<9x128xf32>
    %cst_56 = arith.constant 0.000000e+00 : f32
    %187 = vector.broadcast %cst_56 : f32 to vector<9x128xf32>
    %188 = arith.cmpf oge, %186, %187 : vector<9x128xf32>
    %cst_57 = arith.constant 1.000000e-01 : f32
    %189 = vector.broadcast %cst_57 : f32 to vector<9x128xf32>
    %190 = arith.mulf %189, %186 : vector<9x128xf32>
    %191 = arith.select %188, %186, %190 : vector<9x128xi1>, vector<9x128xf32>
    %192 = vector.shape_cast %191 : vector<9x128xf32> to vector<9x1x128xf32>
    %193 = vector.shape_cast %167 : vector<8x128xf32> to vector<1x8x128xf32>
    %194 = vector.broadcast %192 : vector<9x1x128xf32> to vector<9x8x128xf32>
    %195 = vector.broadcast %193 : vector<1x8x128xf32> to vector<9x8x128xf32>
    %196 = arith.mulf %194, %195 : vector<9x8x128xf32>
    %197 = arith.addf %165, %196 : vector<9x8x128xf32>
    %c0_58 = arith.constant 0 : index
    %c6 = arith.constant 6 : index
    %c0_59 = arith.constant 0 : index
    %c0_60 = arith.constant 0 : index
    %198 = vector.load %arg2[%c0_58, %c6, %c0_59, %c0_60] : memref<1x9x8x128xf32, #tpu.memory_space<vmem>>, vector<1x1x8x128xf32>
    %199 = vector.shape_cast %198 : vector<1x1x8x128xf32> to vector<8x128xf32>
    %200 = vector.extract_strided_slice %199 {offsets = [0, 0], sizes = [1, 128], strides = [1, 1]} : vector<8x128xf32> to vector<1x128xf32>
    %201 = vector.broadcast %0 : vector<9x1xf32> to vector<9x128xf32>
    %202 = vector.broadcast %200 : vector<1x128xf32> to vector<9x128xf32>
    %203 = arith.mulf %201, %202 : vector<9x128xf32>
    %204 = vector.extract_strided_slice %199 {offsets = [1, 0], sizes = [1, 128], strides = [1, 1]} : vector<8x128xf32> to vector<1x128xf32>
    %205 = vector.broadcast %1 : vector<9x1xf32> to vector<9x128xf32>
    %206 = vector.broadcast %204 : vector<1x128xf32> to vector<9x128xf32>
    %207 = arith.mulf %205, %206 : vector<9x128xf32>
    %208 = arith.addf %203, %207 : vector<9x128xf32>
    %209 = vector.broadcast %2 : vector<9x1xf32> to vector<9x128xf32>
    %210 = arith.addf %208, %209 : vector<9x128xf32>
    %cst_61 = arith.constant 0.000000e+00 : f32
    %211 = vector.broadcast %cst_61 : f32 to vector<9x128xf32>
    %212 = arith.cmpf oge, %210, %211 : vector<9x128xf32>
    %cst_62 = arith.constant 1.000000e-01 : f32
    %213 = vector.broadcast %cst_62 : f32 to vector<9x128xf32>
    %214 = arith.mulf %213, %210 : vector<9x128xf32>
    %215 = arith.select %212, %210, %214 : vector<9x128xi1>, vector<9x128xf32>
    %cst_63 = arith.constant dense<0.000000e+00> : vector<9x128xf32>
    %216 = tpu.matmul %3, %215, %cst_63 {dimension_numbers = #tpu.dot_dimension_numbers<[1], [0], [0], [1], [0, 0, 1, 1], [], []>} : vector<9x9xf32>, vector<9x128xf32>, vector<9x128xf32> -> vector<9x128xf32>
    %217 = vector.broadcast %4 : vector<9x1xf32> to vector<9x128xf32>
    %218 = arith.addf %216, %217 : vector<9x128xf32>
    %cst_64 = arith.constant 0.000000e+00 : f32
    %219 = vector.broadcast %cst_64 : f32 to vector<9x128xf32>
    %220 = arith.cmpf oge, %218, %219 : vector<9x128xf32>
    %cst_65 = arith.constant 1.000000e-01 : f32
    %221 = vector.broadcast %cst_65 : f32 to vector<9x128xf32>
    %222 = arith.mulf %221, %218 : vector<9x128xf32>
    %223 = arith.select %220, %218, %222 : vector<9x128xi1>, vector<9x128xf32>
    %224 = vector.shape_cast %223 : vector<9x128xf32> to vector<9x1x128xf32>
    %225 = vector.shape_cast %199 : vector<8x128xf32> to vector<1x8x128xf32>
    %226 = vector.broadcast %224 : vector<9x1x128xf32> to vector<9x8x128xf32>
    %227 = vector.broadcast %225 : vector<1x8x128xf32> to vector<9x8x128xf32>
    %228 = arith.mulf %226, %227 : vector<9x8x128xf32>
    %229 = arith.addf %197, %228 : vector<9x8x128xf32>
    %c0_66 = arith.constant 0 : index
    %c7 = arith.constant 7 : index
    %c0_67 = arith.constant 0 : index
    %c0_68 = arith.constant 0 : index
    %230 = vector.load %arg2[%c0_66, %c7, %c0_67, %c0_68] : memref<1x9x8x128xf32, #tpu.memory_space<vmem>>, vector<1x1x8x128xf32>
    %231 = vector.shape_cast %230 : vector<1x1x8x128xf32> to vector<8x128xf32>
    %232 = vector.extract_strided_slice %231 {offsets = [0, 0], sizes = [1, 128], strides = [1, 1]} : vector<8x128xf32> to vector<1x128xf32>
    %233 = vector.broadcast %0 : vector<9x1xf32> to vector<9x128xf32>
    %234 = vector.broadcast %232 : vector<1x128xf32> to vector<9x128xf32>
    %235 = arith.mulf %233, %234 : vector<9x128xf32>
    %236 = vector.extract_strided_slice %231 {offsets = [1, 0], sizes = [1, 128], strides = [1, 1]} : vector<8x128xf32> to vector<1x128xf32>
    %237 = vector.broadcast %1 : vector<9x1xf32> to vector<9x128xf32>
    %238 = vector.broadcast %236 : vector<1x128xf32> to vector<9x128xf32>
    %239 = arith.mulf %237, %238 : vector<9x128xf32>
    %240 = arith.addf %235, %239 : vector<9x128xf32>
    %241 = vector.broadcast %2 : vector<9x1xf32> to vector<9x128xf32>
    %242 = arith.addf %240, %241 : vector<9x128xf32>
    %cst_69 = arith.constant 0.000000e+00 : f32
    %243 = vector.broadcast %cst_69 : f32 to vector<9x128xf32>
    %244 = arith.cmpf oge, %242, %243 : vector<9x128xf32>
    %cst_70 = arith.constant 1.000000e-01 : f32
    %245 = vector.broadcast %cst_70 : f32 to vector<9x128xf32>
    %246 = arith.mulf %245, %242 : vector<9x128xf32>
    %247 = arith.select %244, %242, %246 : vector<9x128xi1>, vector<9x128xf32>
    %cst_71 = arith.constant dense<0.000000e+00> : vector<9x128xf32>
    %248 = tpu.matmul %3, %247, %cst_71 {dimension_numbers = #tpu.dot_dimension_numbers<[1], [0], [0], [1], [0, 0, 1, 1], [], []>} : vector<9x9xf32>, vector<9x128xf32>, vector<9x128xf32> -> vector<9x128xf32>
    %249 = vector.broadcast %4 : vector<9x1xf32> to vector<9x128xf32>
    %250 = arith.addf %248, %249 : vector<9x128xf32>
    %cst_72 = arith.constant 0.000000e+00 : f32
    %251 = vector.broadcast %cst_72 : f32 to vector<9x128xf32>
    %252 = arith.cmpf oge, %250, %251 : vector<9x128xf32>
    %cst_73 = arith.constant 1.000000e-01 : f32
    %253 = vector.broadcast %cst_73 : f32 to vector<9x128xf32>
    %254 = arith.mulf %253, %250 : vector<9x128xf32>
    %255 = arith.select %252, %250, %254 : vector<9x128xi1>, vector<9x128xf32>
    %256 = vector.shape_cast %255 : vector<9x128xf32> to vector<9x1x128xf32>
    %257 = vector.shape_cast %231 : vector<8x128xf32> to vector<1x8x128xf32>
    %258 = vector.broadcast %256 : vector<9x1x128xf32> to vector<9x8x128xf32>
    %259 = vector.broadcast %257 : vector<1x8x128xf32> to vector<9x8x128xf32>
    %260 = arith.mulf %258, %259 : vector<9x8x128xf32>
    %261 = arith.addf %229, %260 : vector<9x8x128xf32>
    %c0_74 = arith.constant 0 : index
    %c8 = arith.constant 8 : index
    %c0_75 = arith.constant 0 : index
    %c0_76 = arith.constant 0 : index
    %262 = vector.load %arg2[%c0_74, %c8, %c0_75, %c0_76] : memref<1x9x8x128xf32, #tpu.memory_space<vmem>>, vector<1x1x8x128xf32>
    %263 = vector.shape_cast %262 : vector<1x1x8x128xf32> to vector<8x128xf32>
    %264 = vector.extract_strided_slice %263 {offsets = [0, 0], sizes = [1, 128], strides = [1, 1]} : vector<8x128xf32> to vector<1x128xf32>
    %265 = vector.broadcast %0 : vector<9x1xf32> to vector<9x128xf32>
    %266 = vector.broadcast %264 : vector<1x128xf32> to vector<9x128xf32>
    %267 = arith.mulf %265, %266 : vector<9x128xf32>
    %268 = vector.extract_strided_slice %263 {offsets = [1, 0], sizes = [1, 128], strides = [1, 1]} : vector<8x128xf32> to vector<1x128xf32>
    %269 = vector.broadcast %1 : vector<9x1xf32> to vector<9x128xf32>
    %270 = vector.broadcast %268 : vector<1x128xf32> to vector<9x128xf32>
    %271 = arith.mulf %269, %270 : vector<9x128xf32>
    %272 = arith.addf %267, %271 : vector<9x128xf32>
    %273 = vector.broadcast %2 : vector<9x1xf32> to vector<9x128xf32>
    %274 = arith.addf %272, %273 : vector<9x128xf32>
    %cst_77 = arith.constant 0.000000e+00 : f32
    %275 = vector.broadcast %cst_77 : f32 to vector<9x128xf32>
    %276 = arith.cmpf oge, %274, %275 : vector<9x128xf32>
    %cst_78 = arith.constant 1.000000e-01 : f32
    %277 = vector.broadcast %cst_78 : f32 to vector<9x128xf32>
    %278 = arith.mulf %277, %274 : vector<9x128xf32>
    %279 = arith.select %276, %274, %278 : vector<9x128xi1>, vector<9x128xf32>
    %cst_79 = arith.constant dense<0.000000e+00> : vector<9x128xf32>
    %280 = tpu.matmul %3, %279, %cst_79 {dimension_numbers = #tpu.dot_dimension_numbers<[1], [0], [0], [1], [0, 0, 1, 1], [], []>} : vector<9x9xf32>, vector<9x128xf32>, vector<9x128xf32> -> vector<9x128xf32>
    %281 = vector.broadcast %4 : vector<9x1xf32> to vector<9x128xf32>
    %282 = arith.addf %280, %281 : vector<9x128xf32>
    %cst_80 = arith.constant 0.000000e+00 : f32
    %283 = vector.broadcast %cst_80 : f32 to vector<9x128xf32>
    %284 = arith.cmpf oge, %282, %283 : vector<9x128xf32>
    %cst_81 = arith.constant 1.000000e-01 : f32
    %285 = vector.broadcast %cst_81 : f32 to vector<9x128xf32>
    %286 = arith.mulf %285, %282 : vector<9x128xf32>
    %287 = arith.select %284, %282, %286 : vector<9x128xi1>, vector<9x128xf32>
    %288 = vector.shape_cast %287 : vector<9x128xf32> to vector<9x1x128xf32>
    %289 = vector.shape_cast %263 : vector<8x128xf32> to vector<1x8x128xf32>
    %290 = vector.broadcast %288 : vector<9x1x128xf32> to vector<9x8x128xf32>
    %291 = vector.broadcast %289 : vector<1x8x128xf32> to vector<9x8x128xf32>
    %292 = arith.mulf %290, %291 : vector<9x8x128xf32>
    %293 = arith.addf %261, %292 : vector<9x8x128xf32>
    %294 = vector.shape_cast %293 : vector<9x8x128xf32> to vector<72x128xf32>
    %c0_82 = arith.constant 0 : index
    %c0_83 = arith.constant 0 : index
    %295 = vector.load %arg8[%c0_82, %c0_83] : memref<32x72xf32, #tpu.memory_space<vmem>>, vector<32x72xf32>
    %cst_84 = arith.constant dense<0.000000e+00> : vector<32x128xf32>
    %296 = tpu.matmul %295, %294, %cst_84 {dimension_numbers = #tpu.dot_dimension_numbers<[1], [0], [0], [1], [0, 0, 1, 1], [], []>} : vector<32x72xf32>, vector<72x128xf32>, vector<32x128xf32> -> vector<32x128xf32>
    %c0_85 = arith.constant 0 : index
    %c0_86 = arith.constant 0 : index
    %297 = vector.load %arg9[%c0_85, %c0_86] : memref<32x1xf32, #tpu.memory_space<vmem>>, vector<32x1xf32>
    %298 = vector.broadcast %297 : vector<32x1xf32> to vector<32x128xf32>
    %299 = arith.addf %296, %298 : vector<32x128xf32>
    %cst_87 = arith.constant 0.000000e+00 : f32
    %300 = vector.broadcast %cst_87 : f32 to vector<32x128xf32>
    %301 = arith.cmpf oge, %299, %300 : vector<32x128xf32>
    %cst_88 = arith.constant 1.000000e-01 : f32
    %302 = vector.broadcast %cst_88 : f32 to vector<32x128xf32>
    %303 = arith.mulf %302, %299 : vector<32x128xf32>
    %304 = arith.select %301, %299, %303 : vector<32x128xi1>, vector<32x128xf32>
    %c0_89 = arith.constant 0 : index
    %c0_90 = arith.constant 0 : index
    %c0_91 = arith.constant 0 : index
    %305 = vector.load %arg10[%c0_89, %c0_90, %c0_91] : memref<1x32x128xf32, #tpu.memory_space<vmem>>, vector<1x32x128xf32>
    %306 = vector.shape_cast %305 : vector<1x32x128xf32> to vector<32x128xf32>
    %307 = vector.shape_cast %304 : vector<32x128xf32> to vector<1x32x128xf32>
    tpu.vector_store %arg10[%c0_89, %c0_90, %c0_91], %307 {strides = array<i32>} : memref<1x32x128xf32, #tpu.memory_space<vmem>>, vector<1x32x128xf32>,
    return
  }
  func.func @transform_0(%arg0: i32, %arg1: i32) -> (i32, i32, i32, i32) {
    %c0_i32 = arith.constant 0 : i32
    %c0_i32_0 = arith.constant 0 : i32
    %c0_i32_1 = arith.constant 0 : i32
    return %arg0, %c0_i32, %c0_i32_0, %arg1 : i32, i32, i32, i32
  }
  func.func @transform_1(%arg0: i32, %arg1: i32) -> (i32, i32) {
    %c0_i32 = arith.constant 0 : i32
    %c0_i32_0 = arith.constant 0 : i32
    %c0_i32_1 = arith.constant 0 : i32
    return %c0_i32, %c0_i32_0 : i32, i32
  }
  func.func @transform_2(%arg0: i32, %arg1: i32) -> (i32, i32) {
    %c0_i32 = arith.constant 0 : i32
    %c0_i32_0 = arith.constant 0 : i32
    %c0_i32_1 = arith.constant 0 : i32
    return %c0_i32, %c0_i32_0 : i32, i32
  }
  func.func @transform_3(%arg0: i32, %arg1: i32) -> (i32, i32) {
    %c0_i32 = arith.constant 0 : i32
    %c0_i32_0 = arith.constant 0 : i32
    %c0_i32_1 = arith.constant 0 : i32
    return %c0_i32, %c0_i32_0 : i32, i32
  }
  func.func @transform_4(%arg0: i32, %arg1: i32) -> (i32, i32) {
    %c0_i32 = arith.constant 0 : i32
    %c0_i32_0 = arith.constant 0 : i32
    %c0_i32_1 = arith.constant 0 : i32
    return %c0_i32, %c0_i32_0 : i32, i32
  }
  func.func @transform_5(%arg0: i32, %arg1: i32) -> (i32, i32) {
    %c0_i32 = arith.constant 0 : i32
    %c0_i32_0 = arith.constant 0 : i32
    %c0_i32_1 = arith.constant 0 : i32
    return %c0_i32, %c0_i32_0 : i32, i32
  }
  func.func @transform_6(%arg0: i32, %arg1: i32) -> (i32, i32) {
    %c0_i32 = arith.constant 0 : i32
    %c0_i32_0 = arith.constant 0 : i32
    %c0_i32_1 = arith.constant 0 : i32
    return %c0_i32, %c0_i32_0 : i32, i32
  }
  func.func @transform_7(%arg0: i32, %arg1: i32) -> (i32, i32) {
    %c0_i32 = arith.constant 0 : i32
    %c0_i32_0 = arith.constant 0 : i32
    %c0_i32_1 = arith.constant 0 : i32
    return %c0_i32, %c0_i32_0 : i32, i32
  }
  func.func @transform_8(%arg0: i32, %arg1: i32) -> (i32, i32, i32) {
    %c0_i32 = arith.constant 0 : i32
    %c0_i32_0 = arith.constant 0 : i32
    return %arg0, %c0_i32, %arg1 : i32, i32, i32
  }
}

</mosaic_0001>

<bundles_post_ra>
// kernel: pointconv2d_forward.1
= control target key start
LH: loop header
LB: loop body
LE: loop exit
PB: predicated region body
PF: predicated region fallthrough
CT: control target
= control target key end

     0   :  { %13 = vsyncpa [#allocation4], 0  ;;  %s4316_s0 = inlined_call_operand.vmem [shape: f32[2,9,8,256], index: 0, kind: input, shape index: {}]   ;;  %s4317_s1 = inlined_call_operand.vmem [shape: f32[9,1], index: 1, kind: input, shape index: {}]   ;;  %s4318_s2 = inlined_call_operand.vmem [shape: f32[9,1], index: 2, kind: input, shape index: {}]   ;;  %s4319_s3 = inlined_call_operand.vmem [shape: f32[9,1], index: 3, kind: input, shape index: {}]   ;;  %s4320_s4 = inlined_call_operand.vmem [shape: f32[9,9], index: 4, kind: input, shape index: {}]   ;;  %s4321_s5 = inlined_call_operand.vmem [shape: f32[9,1], index: 5, kind: input, shape index: {}]   ;;  %s4322_s6 = inlined_call_operand.vmem [shape: f32[32,72], index: 6, kind: input, shape index: {}]   ;;  %s4323_s7 = inlined_call_operand.vmem [shape: f32[32,1], index: 7, kind: input, shape index: {}]   ;;  %s4324_s8 = inlined_call_operand.hbm [shape: f32[2,32,256], index: 8, kind: output, shape index: {}]  }
   0x1   :  { %15 = vsyncpa [#allocation4 + $0x1], 0  ;;  %s3302_s27 = smov 0   ;;  %s3304_s28 = smov 0  }
   0x2   :  { %s3306_s29 = smov 0   ;;  %s3308_s30 = smov 0  }
   0x3   :  { %s3310_s9 = smov 0   ;;  %s3312_s10 = smov 0  }
   0x4   :  { %s3314_s11 = smov 0   ;;  %s3316_s12 = smov 0  }
   0x5 LB: > { %s2809_s13 = sadd.s32 4294967295, %s3248_s12   ;;  %s2810_s14 = sadd.s32 4294967294, %s3248_s12   ;;  %s3248_s12 = sphi %s3316_s12, %s21_s12   ;;  %s3244_s11 = sphi %s3314_s11, %s4365_s11   ;;  %s3240_s10 = sphi %s3312_s10, %s4364_s10   ;;  %s3236_s9 = sphi %s3310_s9, %s4363_s9   ;;  %s3232_s30 = sphi %s3308_s30, %s4362_s30   ;;  %s3228_s29 = sphi %s3306_s29, %s4361_s29   ;;  %s3224_s28 = sphi %s3304_s28, %s4360_s28   ;;  %s3220_s27 = sphi %s3302_s27, %s4359_s27  }
   0x6   : > { %s30_s15 = sadd.s32 1, %s3240_s10  ;;  %s33_s16 = sadd.s32 1, %s3244_s11 }
   0x7   : > { %p31_p0 = scmp.ge.s32.totalorder %s30_s15, 2  ;;  %p49_p1 = scmp.ne.s32.totalorder %s3228_s29, %s3224_s28 }
   0x8   : > { %p50_p2 = scmp.eq.s32.totalorder %s3248_s12, 0  ;;  %p228_p5 = scmp.eq.s32.totalorder %s2809_s13, 3 }
   0x9   : > { %s4367_s15 = smov (%p31_p0, %s30_s15), 0  ;;  %s4369_s16 = smov (!%p31_p0, %s33_s16), %s3244_s11 }
   0xa   : > { %4328 = sst [smem:[#allocation6_spill]] %s4367_s15  ;;  %s38_s17 = ssub.s32 %s3240_s10, %s4367_s15 }
   0xb   : > { %p3354_p3 = por %p50_p2, %p49_p1  ;;  %p35_p4 = scmp.ge.s32.totalorder %s4369_s16, 2 }
   0xc   : > { %p233_p6 = scmp.ne.s32.totalorder %s3224_s28, %s3220_s27  ;;  %p234_p7 = scmp.eq.s32.totalorder %s2810_s14, 3 }
   0xd   : > { %s4371_s16 = smov (%p35_p4, %s4369_s16), 0  ;;  %p3362_p8 = por %p228_p5, %p49_p1 }
   0xe   : > { %4330 = sst [smem:[#allocation7_spill]] %s4371_s16  ;;  %p3366_p9 = por %p234_p7, %p233_p6 }
   0xf   : > { %s37_s21 = ssub.s32 %s3244_s11, %s4371_s16  ;;  %s42_s23 = sadd.s32 1, %s3228_s29 }
  0x10   : > { %s39_s22 = sor.u32 %s38_s17, %s37_s21  ;;  %p2812_p11 = scmp.ge.s32.totalorder %s3248_s12, 4 }
  0x11   : > { %p40_p10 = scmp.eq.s32.totalorder %s39_s22, 0 }
  0x12   : > { %271 = sbr.rel (%p2812_p11) target bundleno = 37 (0x25), region = 44 }
  0x13   : > { %s3374_s24 = scalar_select %p40_p10, %s3228_s29, %s42_s23  }
  0x19   : > { %274 = sbr.rel (!%p3354_p3) target bundleno = 37 (0x25), region = 48  ;;  %s276_s25 = sand.u32 (%p3354_p3), 1, %s3228_s29  }
  0x1a   : > { %s3067_s26 = smul.u32 (%p3354_p3), 18, %s3244_s11 }
  0x1b   : > { %s3066_s13 = smul.u32 (%p3354_p3), 72, %s276_s25 }
  0x1c   : > { %s280_s14 = sadd.s32 (%p3354_p3), %s3240_s10, %s3067_s26 }
  0x1d   : > { %s2813_s15 = sshll.u32 (%p3354_p3), %s280_s14, 3  ;;  %s278_s22 = scalar_lea.vmem (%p3354_p3), [#allocation2], %s3066_s13 }
  0x1e   : > { %s282_s21 = scalar_lea.vmem (%p3354_p3), %s4316_s0, %s2813_s15 }
  0x1f   : > { %v326_v0 = vld [vmem:[%s282_s21] sm:$0xff] (%p3354_p3)  ;;  %v328_v1 = vld [vmem:[%s282_s21 + $0x10] sm:$0xff] (%p3354_p3) }
  0x20   : > { %v330_v2 = vld [vmem:[%s282_s21 + $0x20] sm:$0xff]  ;;  %327 = vst [vmem:[%s278_s22] sm:$0xff] %v326_v0  ;;  %329 = vst [vmem:[%s278_s22 + $0x8] sm:$0xff] %v328_v1  ;;  %v332_v3 = vld [vmem:[%s282_s21 + $0x30] sm:$0xff] }
  0x21   : > { %331 = vst [vmem:[%s278_s22 + $0x10] sm:$0xff] %v330_v2  ;;  %v334_v4 = vld [vmem:[%s282_s21 + $0x40] sm:$0xff]  ;;  %v336_v5 = vld [vmem:[%s282_s21 + $0x50] sm:$0xff]  ;;  %333 = vst [vmem:[%s278_s22 + $0x18] sm:$0xff] %v332_v3 }
  0x22   : > { %335 = vst [vmem:[%s278_s22 + $0x20] sm:$0xff] %v334_v4  ;;  %337 = vst [vmem:[%s278_s22 + $0x28] sm:$0xff] %v336_v5  ;;  %v338_v6 = vld [vmem:[%s282_s21 + $0x60] sm:$0xff]  ;;  %v340_v7 = vld [vmem:[%s282_s21 + $0x70] sm:$0xff] }
  0x23   : > { %v342_v8 = vld [vmem:[%s282_s21 + $0x80] sm:$0xff]  ;;  %339 = vst [vmem:[%s278_s22 + $0x30] sm:$0xff] %v338_v6  ;;  %341 = vst [vmem:[%s278_s22 + $0x38] sm:$0xff] %v340_v7 }
  0x24   : > { %343 = vst [vmem:[%s278_s22 + $0x40] sm:$0xff] %v342_v8 }
  0x25 PF: > { %p2814_p12 = scmp.ge.s32.totalorder %s3248_s12, 1  ;;  %p348_p13 = scmp.lt.s32.totalorder %s3248_s12, 5 }
  0x27   : > { %p349_p0 = pnand %p2814_p12, %p348_p13 }
  0x29   : > { %352 = sbr.rel (%p349_p0) target bundleno = 769 (0x301), region = 86 }
  0x30   : > { %v390_v9 = vld [vmem:[%s4318_s2] sm:$0xff]  ;;  %v3250_v11 = vmov 0   ;;  %v391_v12 = vld [vmem:[%s4318_s2 + $0x8] sm:$0x1]  ;;  %v2576_v20 = vld [vmem:[%s4323_s7 + $0x18] sm:$0xff]  ;;  %vm461_vm0 = vcmask 72704   ;;  %v409_v23 = vlaneseq }
  0x31   : > { %v388_v10 = vld [vmem:[%s4317_s1] sm:$0xff]  ;;  %3147 = vset.pattern.permute.xlu1 %v3250_v11  ;;  %3146 = vset.pattern.permute.xlu0 %v3250_v11  ;;  %v389_v13 = vld [vmem:[%s4317_s1 + $0x8] sm:$0x1]  ;;  %v2575_v21 = vld [vmem:[%s4323_s7 + $0x10] sm:$0xff]  ;;  %s3433_s25 = sand.u32 1, %s3224_s28   ;;  %vm468_vm1 = vcmask 1040384  }
  0x32   : > { %417 = vperm.xlu1 %3147, %v390_v9   ;;  %401 = vperm.xlu0 %3146, %v388_v10   ;;  %v393_v14 = vld [vmem:[%s4319_s3 + $0x8] sm:$0x1]  ;;  %v392_v15 = vld [vmem:[%s4319_s3] sm:$0xff]  ;;  %s3068_s26 = smul.u32 72, %s3433_s25  ;;  %v3436_v24 = vshrl.u32 %v409_v23, 7  ;;  %vm3251_vm6 = vmmov 1  }
  0x33   : > { %v397_v16 = vld [vmem:[%s4321_s5 + $0x8] sm:$0x1]  ;;  %v396_v17 = vld [vmem:[%s4321_s5] sm:$0xff]  ;;  %vm3549_vm7 = vmpackc.low %vm468_vm1, %vm3251_vm6  ;;  %s2815_s14 = sshll.u32 %s3433_s25, 5  ;;  %s2856_s17 = sshll.u32 %s3236_s9, 3 }
  0x34   : > { %v2574_v18 = vld [vmem:[%s4323_s7 + $0x8] sm:$0xff]  ;;  %v2573_v19 = vld [vmem:[%s4323_s7] sm:$0xff]  ;;  %v3439_v25 = vsub.s32 0, %v3436_v24  ;;  %v427_v26 = vsub.s32 1, %v3436_v24  ;;  %s3442_s13 = scalar_lea.vmem [#allocation2], %s3068_s26  ;;  %s2723_s21 = sadd.s32 %s3232_s30, %s2856_s17 }
  0x35   : > { %v3426_v22 = vld [vmem:[%s4320_s4] sm:$0xff]  ;;  %v3448_v28 = vld [vmem:[%s3442_s13 + $0x28] sm:$0xff]  ;;  %v3455_v31 = vld [vmem:[%s3442_s13 + $0x10] sm:$0xff]  ;;  %s387_s22 = scalar_lea.vmem [#allocation3], %s2815_s14  ;;  %s2857_s9 = sshll.u32 %s2723_s21, 7 }
  0x36   : > { %422 = vperm.xlu1 %3147, %v391_v12   ;;  %406 = vperm.xlu0 %3146, %v389_v13   ;;  %v3445_v27 = vld [vmem:[%s3442_s13] sm:$0xff]  ;;  %v3451_v29 = vld [vmem:[%s3442_s13 + $0x8] sm:$0xff]  ;;  %v2843_v30 = vld [vmem:[%s3442_s13 + $0x38] sm:$0xff]  ;;  %v1630_v36 = vrot.slane %v3448_v28, %v3439_v25  ;;  %v1636_v37 = vrot.slane %v3448_v28, %v427_v26  ;;  %v922_v44 = vrot.slane %v3455_v31, %v3439_v25  ;;  %s2726_s15 = sshll.u32 %s387_s22, 4  ;;  %s4262_s18 = scalar_lea.hbm %s4324_s8, %s2857_s9  ;;  %s4257_s15 = int_to_ptr.vmem [resolvable:$true] %s2726_s15 }
  0x37   : > { %2913 = vmatprep.mubr.msk.f32.mxu0 %vm461_vm0, %v3426_v22  ;;  %2948 = vmatprep.mubr.msk.f32.mxu1 %vm461_vm0, %v3426_v22  ;;  %v412_v32 = vrot.slane %v3445_v27, %v3439_v25  ;;  %v428_v33 = vrot.slane %v3445_v27, %v427_v26  ;;  %v3461_v34 = vld [vmem:[%s3442_s13 + $0x18] sm:$0xff]  ;;  %v3464_v35 = vld [vmem:[%s3442_s13 + $0x20] sm:$0xff]  ;;  %v686_v38 = vrot.slane %v3451_v29, %v3439_v25  ;;  %v2839_v40 = vld [vmem:[%s3442_s13 + $0x30] sm:$0xff]  ;;  %s2712_s23 = scalar_lea.sflag [#allocation4], %s3433_s25  ;;  %s3154_s26 = scalar_lea.vmem %s4257_s15, 512 }
  0x38   : > { %v692_v39 = vrot.slane %v3451_v29, %v427_v26  ;;  %v2847_v41 = vld [vmem:[%s3442_s13 + $0x40] sm:$0xff]  ;;  %v2102_v42 = vrot.slane %v2843_v30, %v3439_v25  ;;  %v2108_v43 = vrot.slane %v2843_v30, %v427_v26  ;;  %v928_v45 = vrot.slane %v3455_v31, %v427_v26  ;;  %p3155_p1 = scmp.ne.s32.totalorder %s4257_s15, %s3154_s26 }
  0x39   : > { %v1158_v46 = vrot.slane %v3461_v34, %v3439_v25  ;;  %v3481_v47 = vrot.slane %v3461_v34, %v427_v26  ;;  %v3485_v48 = vrot.slane %v3464_v35, %v3439_v25  ;;  %v3488_v49 = vrot.slane %v3464_v35, %v427_v26 }
  0x3a   : > { %440 = vperm.xlu1 %3147, %v393_v14   ;;  %435 = vperm.xlu0 %3146, %v392_v15   ;;  %v3495_v52 = vrot.slane %v2839_v40, %v3439_v25  ;;  %v3497_v53 = vrot.slane %v2839_v40, %v427_v26  ;;  %v3500_v54 = vrot.slane %v2847_v41, %v3439_v25  ;;  %p3156_p2 = pnand %p3155_p1, %p3362_p8 }
  0x3b   : > { %v3502_v55 = vrot.slane %v2847_v41, %v427_v26 }
  0x3c   : > { %p3157_p3 = pneg %p3156_p2 }
  0x3e   : > { %458 = vperm.xlu1 %3147, %v397_v16   ;;  %453 = vperm.xlu0 %3146, %v396_v17  }
  0x42   : > { %2584 = vperm.xlu1 %3147, %v2574_v18   ;;  %2579 = vperm.xlu0 %3146, %v2573_v19  }
  0x46   : > { %2594 = vperm.xlu1 %3147, %v2576_v20   ;;  %2589 = vperm.xlu0 %3146, %v2575_v21  }
  0xb1   : > { %v3490_v50 = vpop.permute.xlu1 %417  ;;  %v3492_v51 = vpop.permute.xlu0 %401 }
  0xb2   : > { %v413_v56 = vmul.f32 %v412_v32, %v3492_v51  ;;  %v429_v57 = vmul.f32 %v428_v33, %v3490_v50  ;;  %v1631_v58 = vmul.f32 %v1630_v36, %v3492_v51  ;;  %v1637_v59 = vmul.f32 %v1636_v37, %v3490_v50 }
  0xb3   : > { %v687_v60 = vmul.f32 %v686_v38, %v3492_v51  ;;  %v693_v61 = vmul.f32 %v692_v39, %v3490_v50  ;;  %v2103_v62 = vmul.f32 %v2102_v42, %v3492_v51  ;;  %v2109_v63 = vmul.f32 %v2108_v43, %v3490_v50 }
  0xb4   : > { %v431_v0 = vadd.f32 %v429_v57, %v413_v56  ;;  %v1639_v1 = vadd.f32 %v1637_v59, %v1631_v58  ;;  %v923_v2 = vmul.f32 %v922_v44, %v3492_v51  ;;  %v929_v3 = vmul.f32 %v928_v45, %v3490_v50 }
  0xb5   : > { %v3514_v4 = vpop.permute.xlu1 %422  ;;  %v3516_v5 = vpop.permute.xlu0 %406  ;;  %v695_v6 = vadd.f32 %v693_v61, %v687_v60  ;;  %v2111_v7 = vadd.f32 %v2109_v63, %v2103_v62  ;;  %v3519_v8 = vmul.f32 %v1158_v46, %v3492_v51  ;;  %v3523_v9 = vmul.f32 %v3481_v47, %v3490_v50 }
  0xb6   : > { %v414_v10 = vmul.f32 %v412_v32, %v3516_v5  ;;  %v430_v11 = vmul.f32 %v428_v33, %v3514_v4  ;;  %v1632_v12 = vmul.f32 %v1630_v36, %v3516_v5  ;;  %v1638_v13 = vmul.f32 %v1636_v37, %v3514_v4 }
  0xb7   : > { %v688_v14 = vmul.f32 %v686_v38, %v3516_v5  ;;  %v694_v15 = vmul.f32 %v692_v39, %v3514_v4  ;;  %v2104_v16 = vmul.f32 %v2102_v42, %v3516_v5  ;;  %v2110_v17 = vmul.f32 %v2108_v43, %v3514_v4 }
  0xb8   : > { %v432_v18 = vadd.f32 %v430_v11, %v414_v10  ;;  %v1640_v19 = vadd.f32 %v1638_v13, %v1632_v12  ;;  %v924_v20 = vmul.f32 %v922_v44, %v3516_v5  ;;  %v930_v21 = vmul.f32 %v928_v45, %v3514_v4  ;;  %v3563_v12 = vld [vmem:[%s4320_s4 + $0x8] sm:$0x1] }
  0xb9   : > { %v3535_v23 = vpop.permute.xlu1 %440  ;;  %v3537_v26 = vpop.permute.xlu0 %435  ;;  %v696_v30 = vadd.f32 %v694_v15, %v688_v14  ;;  %v2112_v32 = vadd.f32 %v2110_v17, %v2104_v16  ;;  %v931_v33 = vadd.f32 %v929_v3, %v923_v2  ;;  %v1160_v36 = vmul.f32 %v1158_v46, %v3516_v5 }
  0xba   : > { %v443_v37 = vadd.f32 %v3537_v26, %v431_v0  ;;  %v444_v38 = vadd.f32 %v3535_v23, %v432_v18  ;;  %v1641_v39 = vadd.f32 %v1639_v1, %v3537_v26  ;;  %v1642_v40 = vadd.f32 %v1640_v19, %v3535_v23 }
  0xbb   : > { %v697_v41 = vadd.f32 %v695_v6, %v3537_v26  ;;  %v698_v42 = vadd.f32 %v696_v30, %v3535_v23  ;;  %v2113_v43 = vadd.f32 %v2111_v7, %v3537_v26  ;;  %v2114_v44 = vadd.f32 %v2112_v32, %v3535_v23 }
  0xbc   : > { %vm445_vm2 = vcmp.ge.f32.partialorder %v443_v37, 0.0  ;;  %vm446_vm3 = vcmp.ge.f32.partialorder %v444_v38, 0.0  ;;  %v447_v45 = vmul.f32 0.1, %v443_v37  ;;  %v448_v46 = vmul.f32 0.1, %v444_v38 }
  0xbd   : > { %vm1643_vm4 = vcmp.ge.f32.partialorder %v1641_v39, 0.0  ;;  %vm1644_vm5 = vcmp.ge.f32.partialorder %v1642_v40, 0.0  ;;  %v1645_v56 = vmul.f32 0.1, %v1641_v39  ;;  %v1646_v57 = vmul.f32 0.1, %v1642_v40  ;;  %v3671_v60 = vpop.permute.xlu0 %453 }
  0xbe   : > { %v449_v58 = vsel %vm445_vm2, %v443_v37, %v447_v45  ;;  %v450_v59 = vsel %vm446_vm3, %v444_v38, %v448_v46  ;;  %vm699_vm8 = vcmp.ge.f32.partialorder %v697_v41, 0.0  ;;  %vm700_vm9 = vcmp.ge.f32.partialorder %v698_v42, 0.0 }
  0xbf   : > { %v2996_v61 = vpack.c.bf16 %v450_v59, %v449_v58  ;;  %v1647_v62 = vsel %vm1643_vm4, %v1641_v39, %v1645_v56  ;;  %v1648_v63 = vsel %vm1644_vm5, %v1642_v40, %v1646_v57  ;;  %v701_v0 = vmul.f32 0.1, %v697_v41 }
  0xc0   : > { %v3026_v1 = vpack.c.bf16 %v1648_v63, %v1647_v62  ;;  %v702_v2 = vmul.f32 0.1, %v698_v42  ;;  %vm2115_vm10 = vcmp.ge.f32.partialorder %v2113_v43, 0.0  ;;  %vm2116_vm11 = vcmp.ge.f32.partialorder %v2114_v44, 0.0 }
  0xc1   : > { %2998 = vmatprep.subr.msk.bf16.mxu0 %vm3549_vm7, %v2996_v61  ;;  %v703_v3 = vsel %vm699_vm8, %v697_v41, %v701_v0  ;;  %v2117_v6 = vmul.f32 0.1, %v2113_v43  ;;  %v2118_v7 = vmul.f32 0.1, %v2114_v44  ;;  %v932_v10 = vadd.f32 %v930_v21, %v924_v20 }
  0xc2   : > { %3028 = vmatprep.subr.msk.bf16.mxu1 %vm3549_vm7, %v3026_v1  ;;  %3001 = vmatpush3.bf16.msk.msra.mxu0 %vm3549_vm7, %v2996_v61  ;;  %v704_v11 = vsel %vm700_vm9, %v698_v42, %v702_v2  ;;  %v933_v13 = vadd.f32 %v931_v33, %v3537_v26  ;;  %v1166_v14 = vmul.f32 %v3481_v47, %v3514_v4  ;;  %vm2597_vm8 = vcmask 588800  }
  0xc3   : > { %3031 = vmatpush3.bf16.msk.msra.mxu1 %vm3549_vm7, %v3026_v1  ;;  %v3002_v15 = vpack.c.bf16 %v704_v11, %v703_v3  ;;  %v2119_v16 = vsel %vm2115_vm10, %v2113_v43, %v2117_v6  ;;  %v2120_v17 = vsel %vm2116_vm11, %v2114_v44, %v2118_v7  ;;  %v934_v18 = vadd.f32 %v932_v10, %v3535_v23 }
  0xc4   : > { %v3038_v19 = vpack.c.bf16 %v2120_v17, %v2119_v16  ;;  %vm935_vm12 = vcmp.ge.f32.partialorder %v933_v13, 0.0  ;;  %v937_v20 = vmul.f32 0.1, %v933_v13  ;;  %v1167_v21 = vadd.f32 %v3523_v9, %v3519_v8 }
  0xc5   : > { %3004 = vmatprep.subr.msk.bf16.mxu0 %vm3549_vm7, %v3002_v15  ;;  %2914 = vmatmul.mubr.msk.f32.vlgmr.msra.gmra.mrb[0].mxu0 %vm461_vm0, %v3563_v12  ;;  %vm936_vm13 = vcmp.ge.f32.partialorder %v934_v18, 0.0  ;;  %v938_v47 = vmul.f32 0.1, %v934_v18  ;;  %v1168_v30 = vadd.f32 %v1166_v14, %v1160_v36  ;;  %v1395_v32 = vmul.f32 %v3485_v48, %v3492_v51 }
  0xc6   : > { %3040 = vmatprep.subr.msk.bf16.mxu1 %vm3549_vm7, %v3038_v19  ;;  %2949 = vmatmul.mubr.msk.f32.vlgmr.msra.gmra.mrb[0].mxu1 %vm461_vm0, %v3563_v12  ;;  %v939_v33 = vsel %vm935_vm12, %v933_v13, %v937_v20  ;;  %v1169_v8 = vadd.f32 %v1167_v21, %v3537_v26  ;;  %v1396_v9 = vmul.f32 %v3485_v48, %v3516_v5  ;;  %v3252_v20 = vmov 1966171168  }
  0xc7   : > { %3007 = vmatpush3.bf16.msk.msra.mxu0 %vm3549_vm7, %v3002_v15  ;;  %3043 = vmatpush3.bf16.msk.msra.mxu1 %vm3549_vm7, %v3038_v19  ;;  %v940_v36 = vsel %vm936_vm13, %v934_v18, %v938_v47  ;;  %v1170_v37 = vadd.f32 %v1168_v30, %v3535_v23  ;;  %v1401_v38 = vmul.f32 %v3488_v49, %v3490_v50  ;;  %v557_v21 = vunpack.c.l.s4 %v3252_v20  ;;  %v2569_v47 = vld [vmem:[%s4322_s6] sm:$0xff] }
  0xc8   : > { %v3008_v39 = vpack.c.bf16 %v940_v36, %v939_v33  ;;  %2920 = vmatprep.mubr.msk.f32.mxu0 %vm461_vm0, %v3426_v22  ;;  %2962 = vmatprep.mubr.msk.f32.mxu1 %vm461_vm0, %v3426_v22  ;;  %vm1171_vm14 = vcmp.ge.f32.partialorder %v1169_v8, 0.0  ;;  %v1173_v48 = vmul.f32 0.1, %v1169_v8  ;;  %v1402_v40 = vmul.f32 %v3488_v49, %v3514_v4 }
  0xc9   : > { %vm1172_vm15 = vcmp.ge.f32.partialorder %v1170_v37, 0.0  ;;  %v1174_v41 = vmul.f32 0.1, %v1170_v37  ;;  %v1403_v42 = vadd.f32 %v1401_v38, %v1395_v32  ;;  %v1867_v43 = vmul.f32 %v3495_v52, %v3492_v51  ;;  %v3669_v32 = vpop.permute.xlu1 %458 }
  0xca   : > { %3010 = vmatprep.subr.msk.bf16.mxu0 %vm3549_vm7, %v3008_v39  ;;  %2921 = vmatmul.mubr.msk.f32.vlgmr.msra.gmra.mrb[2].mxu0 %vm461_vm0, %v3563_v12  ;;  %v1175_v44 = vsel %vm1171_vm14, %v1169_v8, %v1173_v48  ;;  %v1404_v45 = vadd.f32 %v1402_v40, %v1396_v9  ;;  %v1868_v46 = vmul.f32 %v3495_v52, %v3516_v5  ;;  %v558_v30 = vunpack.c.0.s8 %v557_v21 }
  0xcb   : > { %2963 = vmatmul.mubr.msk.f32.vlgmr.msra.gmra.mrb[2].mxu1 %vm461_vm0, %v3563_v12  ;;  %3013 = vmatpush3.bf16.msk.msra.mxu0 %vm3549_vm7, %v3008_v39  ;;  %v1176_v49 = vsel %vm1172_vm15, %v1170_v37, %v1174_v41  ;;  %v1405_v56 = vadd.f32 %v1403_v42, %v3537_v26  ;;  %v1873_v57 = vmul.f32 %v3497_v53, %v3490_v50 }
  0xcc   : > { %v3014_v58 = vpack.c.bf16 %v1176_v49, %v1175_v44  ;;  %2927 = vmatprep.mubr.msk.f32.mxu0 %vm461_vm0, %v3426_v22  ;;  %v1406_v59 = vadd.f32 %v1404_v45, %v3535_v23  ;;  %v1874_v52 = vmul.f32 %v3497_v53, %v3514_v4  ;;  %v2339_v61 = vmul.f32 %v3500_v54, %v3492_v51 }
  0xcd   : > { %vm1407_vm1 = vcmp.ge.f32.partialorder %v1405_v56, 0.0  ;;  %v1409_v62 = vmul.f32 0.1, %v1405_v56  ;;  %v1875_v63 = vadd.f32 %v1873_v57, %v1867_v43  ;;  %v2340_v0 = vmul.f32 %v3500_v54, %v3516_v5  ;;  %2990 = vmatprep.mubr.msk.f32.mxu1 %vm2597_vm8, %v2569_v47 }
  0xce   : > { %3016 = vmatprep.subr.msk.bf16.mxu0 %vm3549_vm7, %v3014_v58  ;;  %2928 = vmatmul.mubr.msk.f32.vlgmr.msra.gmra.mrb[4].mxu0 %vm461_vm0, %v3563_v12  ;;  %vm1408_vm2 = vcmp.ge.f32.partialorder %v1406_v59, 0.0  ;;  %v1410_v1 = vmul.f32 0.1, %v1406_v59  ;;  %v1876_v2 = vadd.f32 %v1874_v52, %v1868_v46  ;;  %v2345_v53 = vmul.f32 %v3502_v55, %v3490_v50 }
  0xcf   : > { %3019 = vmatpush3.bf16.msk.msra.mxu0 %vm3549_vm7, %v3014_v58  ;;  %v1411_v51 = vsel %vm1407_vm1, %v1405_v56, %v1409_v62  ;;  %2934 = vmatprep.mubr.msk.f32.mxu0 %vm461_vm0, %v3426_v22  ;;  %v1877_v54 = vadd.f32 %v1875_v63, %v3537_v26  ;;  %v2346_v5 = vmul.f32 %v3502_v55, %v3514_v4 }
  0xd0   : > { %v1412_v3 = vsel %vm1408_vm2, %v1406_v59, %v1410_v1  ;;  %v1878_v6 = vadd.f32 %v1876_v2, %v3535_v23  ;;  %v2347_v7 = vadd.f32 %v2345_v53, %v2339_v61 }
  0xd1   : > { %v3020_v10 = vpack.c.bf16 %v1412_v3, %v1411_v51  ;;  %vm1879_vm3 = vcmp.ge.f32.partialorder %v1877_v54, 0.0  ;;  %v1881_v11 = vmul.f32 0.1, %v1877_v54  ;;  %v2348_v50 = vadd.f32 %v2346_v5, %v2340_v0 }
  0xd2   : > { %2935 = vmatmul.mubr.msk.f32.vlgmr.msra.gmra.mrb[6].mxu0 %vm461_vm0, %v3563_v12  ;;  %vm1880_vm4 = vcmp.ge.f32.partialorder %v1878_v6, 0.0  ;;  %v1882_v13 = vmul.f32 0.1, %v1878_v6  ;;  %v2349_v14 = vadd.f32 %v2347_v7, %v3537_v26 }
  0xd3   : > { %3022 = vmatprep.subr.msk.bf16.mxu0 %vm3549_vm7, %v3020_v10  ;;  %v1883_v15 = vsel %vm1879_vm3, %v1877_v54, %v1881_v11  ;;  %2941 = vmatprep.mubr.msk.f32.mxu0 %vm461_vm0, %v3426_v22  ;;  %v2350_v55 = vadd.f32 %v2348_v50, %v3535_v23 }
  0xd4   : > { %3025 = vmatpush3.bf16.msk.msra.mxu0 %vm3549_vm7, %v3020_v10  ;;  %v1884_v4 = vsel %vm1880_vm4, %v1878_v6, %v1882_v13  ;;  %vm2351_vm5 = vcmp.ge.f32.partialorder %v2349_v14, 0.0  ;;  %v2353_v16 = vmul.f32 0.1, %v2349_v14 }
  0xd5   : > { %v3032_v17 = vpack.c.bf16 %v1884_v4, %v1883_v15  ;;  %vm2352_vm6 = vcmp.ge.f32.partialorder %v2350_v55, 0.0  ;;  %v2354_v18 = vmul.f32 0.1, %v2350_v55 }
  0xd6   : > { %v2355_v19 = vsel %vm2351_vm5, %v2349_v14, %v2353_v16 }
  0xd7   : > { %3034 = vmatprep.subr.msk.bf16.mxu0 %vm3549_vm7, %v3032_v17  ;;  %2942 = vmatmul.mubr.msk.f32.vlgmr.msra.gmra.mrb[8].mxu0 %vm461_vm0, %v3563_v12  ;;  %v2356_v26 = vsel %vm2352_vm6, %v2350_v55, %v2354_v18 }
  0xd8   : > { %3037 = vmatpush3.bf16.msk.msra.mxu0 %vm3549_vm7, %v3032_v17  ;;  %v3044_v23 = vpack.c.bf16 %v2356_v26, %v2355_v19  ;;  %2955 = vmatprep.mubr.msk.f32.mxu0 %vm461_vm0, %v3426_v22 }
  0xda   : > { %3046 = vmatprep.subr.msk.bf16.mxu0 %vm3549_vm7, %v3044_v23 }
  0xdb   : > { %2956 = vmatmul.mubr.msk.f32.vlgmr.msra.gmra.mrb[10].mxu0 %vm461_vm0, %v3563_v12 }
  0xdc   : > { %3049 = vmatpush3.bf16.msk.msra.mxu0 %vm3549_vm7, %v3044_v23  ;;  %2969 = vmatprep.mubr.msk.f32.mxu0 %vm461_vm0, %v3426_v22 }
  0xdf   : > { %2970 = vmatmul.mubr.msk.f32.vlgmr.msra.gmra.mrb[12].mxu0 %vm461_vm0, %v3563_v12  ;;  %v3675_v12 = vsub.s32 %v558_v30, %v3436_v24 }
 0x198   : > { %v2915_v33 = vpop.f32.mrb[0].mxu0 }
 0x199   : > { %v544_v22 = vadd.f32 %v2915_v33, %v3669_v32  ;;  %v2950_v8 = vpop.f32.mrb[0].mxu1  ;;  %v538_v9 = vpop.f32.mrb[1].mxu0 }
 0x19a   : > { %v1724_v36 = vadd.f32 %v2950_v8, %v3669_v32  ;;  %v539_v37 = vadd.f32 %v538_v9, %v3671_v60  ;;  %v1718_v38 = vpop.f32.mrb[1].mxu1 }
 0x19b   : > { %vm548_vm0 = vcmp.ge.f32.partialorder %v544_v22, 0.0  ;;  %v550_v39 = vmul.f32 0.1, %v544_v22  ;;  %v1719_v48 = vadd.f32 %v1718_v38, %v3671_v60 }
 0x19c   : > { %vm1728_vm7 = vcmp.ge.f32.partialorder %v1724_v36, 0.0  ;;  %v1730_v40 = vmul.f32 0.1, %v1724_v36  ;;  %vm547_vm9 = vcmp.ge.f32.partialorder %v539_v37, 0.0  ;;  %v549_v41 = vmul.f32 0.1, %v539_v37 }
 0x19d   : > { %v552_v42 = vsel %vm548_vm0, %v544_v22, %v550_v39  ;;  %vm1727_vm10 = vcmp.ge.f32.partialorder %v1719_v48, 0.0  ;;  %v1729_v43 = vmul.f32 0.1, %v1719_v48  ;;  %v2922_v44 = vpop.f32.mrb[2].mxu0 }
 0x19e   : > { %v610_v24 = vrot.slane %v552_v42, %v3675_v12  ;;  %v1732_v45 = vsel %vm1728_vm7, %v1724_v36, %v1730_v40  ;;  %v551_v46 = vsel %vm547_vm9, %v539_v37, %v549_v41  ;;  %v3681_v49 = vpop.f32.mrb[2].mxu1  ;;  %v3683_v56 = vpop.f32.mrb[3].mxu0  ;;  %v3692_v1 = vadd.f32 %v2922_v44, %v3669_v32 }
 0x19f   : > { %v1790_v57 = vrot.slane %v1732_v45, %v3675_v12  ;;  %v555_v58 = vcombine.high %v551_v46, %v551_v46  ;;  %v562_v59 = vrot.slane %v551_v46, %v3675_v12  ;;  %v1731_v52 = vsel %vm1727_vm10, %v1719_v48, %v1729_v43  ;;  %v3687_v61 = vpop.f32.mrb[3].mxu1 }
 0x1a0   : > { %v617_v62 = vrot.slane %v610_v24, %v3675_v12  ;;  %v1735_v63 = vcombine.high %v1731_v52, %v1731_v52  ;;  %v1742_v0 = vrot.slane %v1731_v52, %v3675_v12  ;;  %vm784_vm11 = vcmp.ge.f32.partialorder %v3692_v1, 0.0 }
 0x1a1   : > { %v3695_v2 = vrot.slane %v1790_v57, %v3675_v12  ;;  %v569_v53 = vrot.slane %v555_v58, %v3675_v12  ;;  %v570_v51 = vcombine.high %v562_v59, %v562_v59  ;;  %v578_v54 = vrot.slane %v562_v59, %v3675_v12  ;;  %v2929_v5 = vpop.f32.mrb[4].mxu0 }
 0x1a2   : > { %v653_v3 = vrot.slane %v617_v62, %v3439_v25  ;;  %v1749_v6 = vrot.slane %v1735_v63, %v3675_v12  ;;  %v1758_v7 = vrot.slane %v1742_v0, %v3675_v12  ;;  %v1010_v10 = vpop.f32.mrb[5].mxu0  ;;  %v1750_v14 = vcombine.high %v1742_v0, %v1742_v0 }
 0x1a3   : > { %v571_v11 = vcombine.high %v569_v53, %v569_v53  ;;  %v585_v50 = vrot.slane %v569_v53, %v3675_v12  ;;  %v592_v13 = vrot.slane %v570_v51, %v3675_v12  ;;  %v600_v4 = vcombine.high %v578_v54, %v578_v54 }
 0x1a4   : > { %v3705_v15 = vmul.f32 %v653_v3, %v3445_v27  ;;  %v621_v16 = vrot.slane %v578_v54, %v3439_v25  ;;  %v1751_v47 = vcombine.high %v1749_v6, %v1749_v6  ;;  %v3716_v30 = vrot.slane %v1749_v6, %v3675_v12 }
 0x1a5   : > { %v599_v17 = vrot.slane %v571_v11, %v3675_v12  ;;  %v601_v18 = vcombine.high %v585_v50, %v585_v50  ;;  %v602_v19 = vcombine.high %v592_v13, %v592_v13  ;;  %v625_v26 = vrot.slane %v592_v13, %v3439_v25  ;;  %v2936_v23 = vpop.f32.mrb[6].mxu0 }
 0x1a6   : > { %v629_v20 = vrot.slane %v600_v4, %v3439_v25  ;;  %v637_v21 = vrot.slane %v585_v50, %v3439_v25  ;;  %v3718_v33 = vpop.f32.mrb[7].mxu0  ;;  %v3724_v37 = vmul.f32 %v621_v16, %v3445_v27  ;;  %v3733_v48 = vrot.slane %v1750_v14, %v3675_v12 }
 0x1a7   : > { %v603_v22 = vcombine.high %v599_v17, %v599_v17  ;;  %v633_v8 = vrot.slane %v602_v19, %v3439_v25  ;;  %v641_v9 = vrot.slane %v599_v17, %v3439_v25  ;;  %v645_v36 = vrot.slane %v601_v18, %v3439_v25 }
 0x1a8   : > { %v3727_v38 = vmul.f32 %v625_v26, %v3445_v27  ;;  %v3730_v39 = vmul.f32 %v629_v20, %v3445_v27  ;;  %v3740_v42 = vmul.f32 %v637_v21, %v3445_v27  ;;  %v3746_v44 = vrot.slane %v1751_v47, %v3675_v12 }
 0x1a9   : > { %v649_v40 = vrot.slane %v603_v22, %v3439_v25  ;;  %v3737_v41 = vmul.f32 %v633_v8, %v3445_v27  ;;  %v3743_v43 = vmul.f32 %v641_v9, %v3445_v27  ;;  %v1780_v24 = vcombine.high %v1758_v7, %v1758_v7 }
 0x1aa   : > { %v1781_v45 = vcombine.high %v3716_v30, %v3716_v30  ;;  %v1782_v46 = vcombine.high %v3733_v48, %v3733_v48  ;;  %v3752_v57 = vpop.f32.mrb[8].mxu0  ;;  %v3755_v58 = vmul.f32 %v645_v36, %v3445_v27  ;;  %v1801_v52 = vrot.slane %v1758_v7, %v3439_v25 }
 0x1ab   : > { %v3758_v59 = vmul.f32 %v649_v40, %v3445_v27  ;;  %v3763_v63 = vpop.f32.mrb[9].mxu0  ;;  %v3768_v53 = vrot.slane %v1780_v24, %v3439_v25  ;;  %v786_v6 = vmul.f32 0.1, %v3692_v1  ;;  %v2196_v7 = vadd.f32 %v3681_v49, %v3669_v32 }
 0x1ac   : > { %v3771_v51 = vrot.slane %v1782_v46, %v3439_v25  ;;  %v3778_v3 = vrot.slane %v1781_v45, %v3439_v25  ;;  %v3784_v11 = vmul.f32 %v3448_v28, %v1801_v52  ;;  %v775_v50 = vadd.f32 %v3683_v56, %v3671_v60 }
 0x1ad   : > { %v2191_v13 = vadd.f32 %v3687_v61, %v3671_v60  ;;  %v1016_v14 = vadd.f32 %v2929_v5, %v3669_v32  ;;  %v788_v16 = vsel %vm784_vm11, %v3692_v1, %v786_v6  ;;  %vm2200_vm12 = vcmp.ge.f32.partialorder %v2196_v7, 0.0 }
 0x1ae   : > { %v3791_v4 = vpop.f32.mrb[10].mxu0  ;;  %v2202_v17 = vmul.f32 0.1, %v2196_v7  ;;  %v3797_v49 = vadd.f32 %v1010_v10, %v3671_v60  ;;  %v846_v56 = vrot.slane %v788_v16, %v3675_v12  ;;  %vm783_vm13 = vcmp.ge.f32.partialorder %v775_v50, 0.0 }
 0x1af   : > { %v3799_v28 = vpop.f32.mrb[11].mxu0  ;;  %v785_v18 = vmul.f32 0.1, %v775_v50  ;;  %vm2199_vm14 = vcmp.ge.f32.partialorder %v2191_v13, 0.0  ;;  %v2201_v5 = vmul.f32 0.1, %v2191_v13  ;;  %v3805_v21 = vadd.f32 %v2936_v23, %v3669_v32 }
 0x1b0   : > { %v2204_v61 = vsel %vm2200_vm12, %v2196_v7, %v2202_v17  ;;  %vm1020_vm15 = vcmp.ge.f32.partialorder %v1016_v14, 0.0  ;;  %v1022_v19 = vmul.f32 0.1, %v1016_v14  ;;  %v853_v26 = vrot.slane %v846_v56, %v3675_v12 }
 0x1b1   : > { %v2262_v1 = vrot.slane %v2204_v61, %v3675_v12  ;;  %v787_v20 = vsel %vm783_vm13, %v775_v50, %v785_v18  ;;  %v2203_v8 = vsel %vm2199_vm14, %v2191_v13, %v2201_v5  ;;  %vm1019_vm1 = vcmp.ge.f32.partialorder %v3797_v49, 0.0 }
 0x1b2   : > { %v3807_v10 = vpop.f32.mrb[12].mxu0  ;;  %v791_v47 = vcombine.high %v787_v20, %v787_v20  ;;  %v798_v22 = vrot.slane %v787_v20, %v3675_v12  ;;  %v1024_v9 = vsel %vm1020_vm15, %v1016_v14, %v1022_v19  ;;  %v889_v40 = vrot.slane %v853_v26, %v3439_v25 }
 0x1b3   : > { %v3810_v36 = vpop.f32.mrb[13].mxu0  ;;  %v3814_v24 = vrot.slane %v2262_v1, %v3675_v12  ;;  %v2207_v45 = vcombine.high %v2203_v8, %v2203_v8  ;;  %v2214_v46 = vrot.slane %v2203_v8, %v3675_v12  ;;  %v1082_v7 = vrot.slane %v1024_v9, %v3675_v12 }
 0x1b4   : > { %v805_v23 = vrot.slane %v791_v47, %v3675_v12  ;;  %v806_v52 = vcombine.high %v798_v22, %v798_v22  ;;  %v814_v6 = vrot.slane %v798_v22, %v3675_v12  ;;  %v907_v50 = vmul.f32 %v3451_v29, %v889_v40 }
 0x1b5   : > { %4335 = vst [vmem:[#allocation8_spill] sm:$0xff] %v3814_v24  ;;  %v2221_v13 = vrot.slane %v2207_v45, %v3675_v12  ;;  %v2222_v14 = vcombine.high %v2214_v46, %v2214_v46  ;;  %v3823_v16 = vrot.slane %v2214_v46, %v3675_v12  ;;  %vm1256_vm2 = vcmp.ge.f32.partialorder %v3805_v21, 0.0 }
 0x1b6   : > { %v807_v17 = vcombine.high %v805_v23, %v805_v23  ;;  %v821_v56 = vrot.slane %v805_v23, %v3675_v12  ;;  %v828_v18 = vrot.slane %v806_v52, %v3675_v12  ;;  %v836_v61 = vcombine.high %v814_v6, %v814_v6 }
 0x1b7   : > { %v916_v5 = vadd.f32 %v907_v50, %v3705_v15  ;;  %v857_v19 = vrot.slane %v814_v6, %v3439_v25  ;;  %v2223_v26 = vcombine.high %v2221_v13, %v2221_v13  ;;  %v3830_v1 = vrot.slane %v2221_v13, %v3675_v12 }
 0x1b8   : > { %v835_v20 = vrot.slane %v807_v17, %v3675_v12  ;;  %v837_v47 = vcombine.high %v821_v56, %v821_v56  ;;  %v838_v22 = vcombine.high %v828_v18, %v828_v18  ;;  %v861_v8 = vrot.slane %v828_v18, %v3439_v25 }
 0x1b9   : > { %v865_v9 = vrot.slane %v836_v61, %v3439_v25  ;;  %v873_v40 = vrot.slane %v821_v56, %v3439_v25  ;;  %v899_v45 = vmul.f32 %v3451_v29, %v857_v19  ;;  %v3838_v15 = vrot.slane %v2222_v14, %v3675_v12 }
 0x1ba   : > { %v839_v46 = vcombine.high %v835_v20, %v835_v20  ;;  %v869_v23 = vrot.slane %v838_v22, %v3439_v25  ;;  %v877_v52 = vrot.slane %v835_v20, %v3439_v25  ;;  %v881_v6 = vrot.slane %v837_v47, %v3439_v25 }
 0x1bb   : > { %v900_v50 = vmul.f32 %v3451_v29, %v861_v8  ;;  %v901_v13 = vmul.f32 %v3451_v29, %v865_v9  ;;  %v903_v17 = vmul.f32 %v3451_v29, %v873_v40  ;;  %v3847_v56 = vadd.f32 %v899_v45, %v3724_v37 }
 0x1bc   : > { %v885_v18 = vrot.slane %v839_v46, %v3439_v25  ;;  %v902_v14 = vmul.f32 %v3451_v29, %v869_v23  ;;  %v904_v61 = vmul.f32 %v3451_v29, %v877_v52  ;;  %v905_v19 = vmul.f32 %v3451_v29, %v881_v6 }
 0x1bd   : > { %v3854_v20 = vadd.f32 %v900_v50, %v3727_v38  ;;  %v3857_v47 = vadd.f32 %v901_v13, %v3730_v39  ;;  %v3860_v22 = vadd.f32 %v903_v17, %v3740_v42  ;;  %v3863_v37 = vrot.slane %v2223_v26, %v3675_v12 }
 0x1be   : > { %v3866_v8 = vadd.f32 %v902_v14, %v3737_v41  ;;  %v3869_v9 = vadd.f32 %v904_v61, %v3743_v43  ;;  %v3872_v40 = vadd.f32 %v905_v19, %v3755_v58  ;;  %v3876_v38 = vmul.f32 %v3451_v29, %v885_v18 }
 0x1bf   : > { %v1089_v43 = vrot.slane %v1082_v7, %v3675_v12  ;;  %v1021_v26 = vmul.f32 0.1, %v3797_v49  ;;  %v1258_v58 = vmul.f32 0.1, %v3805_v21  ;;  %v1247_v45 = vadd.f32 %v3718_v33, %v3671_v60 }
 0x1c0   : > { %v1488_v46 = vadd.f32 %v3752_v57, %v3669_v32  ;;  %v3896_v23 = vadd.f32 %v3763_v63, %v3671_v60  ;;  %v3903_v50 = vadd.f32 %v3791_v4, %v3669_v32 }
 0x1c1   : > { %v1125_v7 = vrot.slane %v1089_v43, %v3439_v25  ;;  %v1023_v52 = vsel %vm1019_vm1, %v3797_v49, %v1021_v26  ;;  %v1260_v6 = vsel %vm1256_vm2, %v3805_v21, %v1258_v58  ;;  %vm1255_vm3 = vcmp.ge.f32.partialorder %v1247_v45, 0.0 }
 0x1c2   : > { %v1027_v13 = vcombine.high %v1023_v52, %v1023_v52  ;;  %v1034_v33 = vrot.slane %v1023_v52, %v3675_v12  ;;  %v1318_v17 = vrot.slane %v1260_v6, %v3675_v12  ;;  %v1257_v63 = vmul.f32 0.1, %v1247_v45 }
 0x1c3   : > { %v1143_v57 = vmul.f32 %v3455_v31, %v1125_v7  ;;  %vm1492_vm4 = vcmp.ge.f32.partialorder %v1488_v46, 0.0  ;;  %v1494_v18 = vmul.f32 0.1, %v1488_v46  ;;  %v3915_v26 = vadd.f32 %v3799_v28, %v3671_v60 }
 0x1c4   : > { %v1041_v14 = vrot.slane %v1027_v13, %v3675_v12  ;;  %v1042_v49 = vcombine.high %v1034_v33, %v1034_v33  ;;  %v1050_v21 = vrot.slane %v1034_v33, %v3675_v12  ;;  %v1325_v61 = vrot.slane %v1318_v17, %v3675_v12 }
 0x1c5   : > { %v3911_v4 = vadd.f32 %v1143_v57, %v916_v5  ;;  %v1259_v19 = vsel %vm1255_vm3, %v1247_v45, %v1257_v63  ;;  %v1496_v43 = vsel %vm1492_vm4, %v1488_v46, %v1494_v18  ;;  %vm1491_vm5 = vcmp.ge.f32.partialorder %v3896_v23, 0.0 }
 0x1c6   : > { %v1043_v58 = vcombine.high %v1041_v14, %v1041_v14  ;;  %v1057_v7 = vrot.slane %v1041_v14, %v3675_v12  ;;  %v1064_v52 = vrot.slane %v1042_v49, %v3675_v12  ;;  %v1072_v6 = vcombine.high %v1050_v21, %v1050_v21 }
 0x1c7   : > { %v1093_v13 = vrot.slane %v1050_v21, %v3439_v25  ;;  %v1361_v33 = vrot.slane %v1325_v61, %v3439_v25  ;;  %v1263_v5 = vcombine.high %v1259_v19, %v1259_v19  ;;  %v1270_v45 = vrot.slane %v1259_v19, %v3675_v12 }
 0x1c8   : > { %v1071_v46 = vrot.slane %v1043_v58, %v3675_v12  ;;  %v1073_v17 = vcombine.high %v1057_v7, %v1057_v7  ;;  %v1074_v28 = vcombine.high %v1064_v52, %v1064_v52  ;;  %v1097_v57 = vrot.slane %v1064_v52, %v3439_v25 }
 0x1c9   : > { %v1101_v63 = vrot.slane %v1072_v6, %v3439_v25  ;;  %v1109_v18 = vrot.slane %v1057_v7, %v3439_v25  ;;  %v1135_v14 = vmul.f32 %v3455_v31, %v1093_v13  ;;  %v3929_v49 = vmul.f32 %v3461_v34, %v1361_v33 }
 0x1ca   : > { %v1075_v21 = vcombine.high %v1071_v46, %v1071_v46  ;;  %v1105_v61 = vrot.slane %v1074_v28, %v3439_v25  ;;  %v1113_v19 = vrot.slane %v1071_v46, %v3439_v25  ;;  %v1117_v58 = vrot.slane %v1073_v17, %v3439_v25 }
 0x1cb   : > { %v1136_v55 = vmul.f32 %v3455_v31, %v1097_v57  ;;  %v1137_v52 = vmul.f32 %v3455_v31, %v1101_v63  ;;  %v1139_v6 = vmul.f32 %v3455_v31, %v1109_v18  ;;  %v1144_v7 = vadd.f32 %v1135_v14, %v3847_v56 }
 0x1cc   : > { %v1121_v13 = vrot.slane %v1075_v21, %v3439_v25  ;;  %v3940_v33 = vmul.f32 %v3455_v31, %v1105_v61  ;;  %v3943_v42 = vmul.f32 %v3455_v31, %v1113_v19  ;;  %v3946_v46 = vmul.f32 %v3455_v31, %v1117_v58 }
 0x1cd   : > { %v3949_v17 = vadd.f32 %v1136_v55, %v3854_v20  ;;  %v3952_v28 = vadd.f32 %v1137_v52, %v3857_v47  ;;  %v3955_v57 = vadd.f32 %v1139_v6, %v3860_v22  ;;  %v1277_v56 = vrot.slane %v1263_v5, %v3675_v12 }
 0x1ce   : > { %v3959_v63 = vmul.f32 %v3455_v31, %v1121_v13  ;;  %v1278_v18 = vcombine.high %v1270_v45, %v1270_v45  ;;  %v1286_v14 = vrot.slane %v1270_v45, %v3675_v12  ;;  %v1554_v21 = vrot.slane %v1496_v43, %v3675_v12 }
 0x1cf   : > { %v1279_v61 = vcombine.high %v1277_v56, %v1277_v56  ;;  %v1293_v55 = vrot.slane %v1277_v56, %v3675_v12  ;;  %v1493_v20 = vmul.f32 0.1, %v3896_v23  ;;  %vm1964_vm6 = vcmp.ge.f32.partialorder %v3903_v50, 0.0 }
 0x1d0   : > { %v1300_v47 = vrot.slane %v1278_v18, %v3675_v12  ;;  %v1308_v22 = vcombine.high %v1286_v14, %v1286_v14  ;;  %v1329_v5 = vrot.slane %v1286_v14, %v3439_v25  ;;  %v1561_v31 = vrot.slane %v1554_v21, %v3675_v12 }
 0x1d1   : > { %v1307_v19 = vrot.slane %v1279_v61, %v3675_v12  ;;  %v1309_v58 = vcombine.high %v1293_v55, %v1293_v55  ;;  %v1345_v45 = vrot.slane %v1293_v55, %v3439_v25  ;;  %v1495_v43 = vsel %vm1491_vm5, %v3896_v23, %v1493_v20 }
 0x1d2   : > { %v1310_v52 = vcombine.high %v1300_v47, %v1300_v47  ;;  %v1333_v6 = vrot.slane %v1300_v47, %v3439_v25  ;;  %v1337_v13 = vrot.slane %v1308_v22, %v3439_v25  ;;  %v1371_v56 = vmul.f32 %v3461_v34, %v1329_v5 }
 0x1d3   : > { %v1311_v18 = vcombine.high %v1307_v19, %v1307_v19  ;;  %v1349_v14 = vrot.slane %v1307_v19, %v3439_v25  ;;  %v1353_v21 = vrot.slane %v1309_v58, %v3439_v25  ;;  %v3980_v61 = vmul.f32 %v3461_v34, %v1345_v45 }
 0x1d4   : > { %v1341_v55 = vrot.slane %v1310_v52, %v3439_v25  ;;  %v1372_v0 = vmul.f32 %v3461_v34, %v1333_v6  ;;  %v3985_v23 = vmul.f32 %v3461_v34, %v1337_v13  ;;  %v3987_v20 = vadd.f32 %v1371_v56, %v1144_v7 }
 0x1d5   : > { %v3990_v47 = vrot.slane %v1311_v18, %v3439_v25  ;;  %v3993_v22 = vmul.f32 %v3461_v34, %v1349_v14  ;;  %v3996_v5 = vmul.f32 %v3461_v34, %v1353_v21  ;;  %v1597_v19 = vrot.slane %v1561_v31, %v3439_v25 }
 0x1d6   : > { %v4000_v58 = vmul.f32 %v3461_v34, %v1341_v55  ;;  %v1499_v45 = vcombine.high %v1495_v43, %v1495_v43  ;;  %v1506_v52 = vrot.slane %v1495_v43, %v3675_v12  ;;  %v1966_v7 = vmul.f32 0.1, %v3903_v50 }
 0x1d7   : > { %v4005_v6 = vmul.f32 %v3464_v35, %v1597_v19  ;;  %vm1963_vm0 = vcmp.ge.f32.partialorder %v3915_v26, 0.0  ;;  %v1965_v13 = vmul.f32 0.1, %v3915_v26  ;;  %v2432_v56 = vadd.f32 %v3807_v10, %v3669_v32 }
 0x1d8   : > { %v1513_v31 = vrot.slane %v1499_v45, %v3675_v12  ;;  %v1514_v18 = vcombine.high %v1506_v52, %v1506_v52  ;;  %v1522_v34 = vrot.slane %v1506_v52, %v3675_v12  ;;  %v1968_v43 = vsel %vm1964_vm6, %v3903_v50, %v1966_v7 }
 0x1d9   : > { %4336 = vst [vmem:[#allocation9_spill] sm:$0xff] %v4005_v6  ;;  %v2026_v14 = vrot.slane %v1968_v43, %v3675_v12  ;;  %v1967_v21 = vsel %vm1963_vm0, %v3915_v26, %v1965_v13  ;;  %vm2436_vm7 = vcmp.ge.f32.partialorder %v2432_v56, 0.0  ;;  %v2438_v55 = vmul.f32 0.1, %v2432_v56 }
 0x1da   : > { %v1515_v19 = vcombine.high %v1513_v31, %v1513_v31  ;;  %v1529_v54 = vrot.slane %v1513_v31, %v3675_v12  ;;  %v1536_v32 = vrot.slane %v1514_v18, %v3675_v12  ;;  %v1544_v10 = vcombine.high %v1522_v34, %v1522_v34 }
 0x1db   : > { %v1565_v45 = vrot.slane %v1522_v34, %v3439_v25  ;;  %v4022_v52 = vrot.slane %v2026_v14, %v3675_v12  ;;  %v1971_v27 = vcombine.high %v1967_v21, %v1967_v21  ;;  %v1978_v50 = vrot.slane %v1967_v21, %v3675_v12 }
 0x1dc   : > { %v4026_v7 = vrot.slane %v1515_v19, %v3675_v12  ;;  %v1545_v26 = vcombine.high %v1529_v54, %v1529_v54  ;;  %v1546_v13 = vcombine.high %v1536_v32, %v1536_v32  ;;  %v1569_v43 = vrot.slane %v1536_v32, %v3439_v25 }
 0x1dd   : > { %4337 = vst [vmem:[#allocation10_spill] sm:$0xff] %v4022_v52  ;;  %v1573_v31 = vrot.slane %v1544_v10, %v3439_v25  ;;  %v1581_v18 = vrot.slane %v1529_v54, %v3439_v25  ;;  %v1607_v41 = vmul.f32 %v3464_v35, %v1565_v45  ;;  %v1985_v45 = vrot.slane %v1971_v27, %v3675_v12 }
 0x1de   : > { %v1547_v14 = vcombine.high %v4026_v7, %v4026_v7  ;;  %v1577_v21 = vrot.slane %v1546_v13, %v3439_v25  ;;  %v4040_v39 = vrot.slane %v1545_v26, %v3439_v25  ;;  %v1608_v32 = vmul.f32 %v3464_v35, %v1569_v43 }
 0x1df   : > { %v1609_v54 = vmul.f32 %v3464_v35, %v1573_v31  ;;  %v4045_v10 = vmul.f32 %v3464_v35, %v1581_v18  ;;  %v1986_v29 = vcombine.high %v1978_v50, %v1978_v50  ;;  %v1994_v13 = vrot.slane %v1978_v50, %v3675_v12 }
 0x1e0   : > { %v4049_v34 = vrot.slane %v1547_v14, %v3439_v25  ;;  %v2440_v19 = vsel %vm2436_vm7, %v2432_v56, %v2438_v55  ;;  %v1987_v62 = vcombine.high %v1985_v45, %v1985_v45  ;;  %v4054_v26 = vrot.slane %v1985_v45, %v3675_v12  ;;  %v4085_v14 = vld [vmem:[%s3442_s13 + $0x30] sm:$0xff] }
 0x1e1   : > { %v2498_v43 = vrot.slane %v2440_v19, %v3675_v12  ;;  %v2427_v35 = vadd.f32 %v3810_v36, %v3671_v60  ;;  %v2008_v31 = vrot.slane %v1986_v29, %v3675_v12  ;;  %v2016_v27 = vcombine.high %v1994_v13, %v1994_v13 }
 0x1e2   : > { %v2037_v18 = vrot.slane %v1994_v13, %v3439_v25  ;;  %v1381_v50 = vadd.f32 %v1372_v0, %v3949_v17  ;;  %v4063_v56 = vrot.slane %v1987_v62, %v3675_v12  ;;  %v1616_v17 = vadd.f32 %v1607_v41, %v3987_v20  ;;  %v4078_v13 = vld [vmem:[%s3442_s13 + $0x28] sm:$0xff]  ;;  %v4093_v20 = vld [vmem:[%s3442_s13 + $0x38] sm:$0xff] }
 0x1e3   : > { %v4070_v60 = vrot.slane %v2498_v43, %v3675_v12  ;;  %v2018_v36 = vcombine.high %v2008_v31, %v2008_v31  ;;  %v2041_v29 = vrot.slane %v2008_v31, %v3439_v25  ;;  %v2045_v19 = vrot.slane %v2016_v27, %v3439_v25 }
 0x1e4   : > { %vm2435_vm9 = vcmp.ge.f32.partialorder %v2427_v35, 0.0  ;;  %v2437_v0 = vmul.f32 0.1, %v2427_v35  ;;  %v1617_v45 = vadd.f32 %v1608_v32, %v1381_v50  ;;  %v4339_v43 = vrot.slane %v3733_v48, %v3439_v25 }
 0x1e5   : > { %4338 = vst [vmem:[#allocation11_spill] sm:$0xff] %v4070_v60  ;;  %v2079_v31 = vmul.f32 %v4085_v14, %v2037_v18  ;;  %v2080_v27 = vmul.f32 %v4085_v14, %v2041_v29  ;;  %v2277_v62 = vrot.slane %v3838_v15, %v3439_v25  ;;  %v1852_v41 = vadd.f32 %v3784_v11, %v1616_v17 }
 0x1e6   : > { %v1844_v55 = vmul.f32 %v4078_v13, %v4339_v43  ;;  %v2439_v60 = vsel %vm2435_vm9, %v2427_v35, %v2437_v0  ;;  %v4340_v48 = vrot.slane %v3823_v16, %v3439_v25  ;;  %v1147_v50 = vadd.f32 %v3940_v33, %v3866_v8  ;;  %v4107_v0 = vld [vmem:[%s3442_s13 + $0x20] sm:$0xff] }
 0x1e7   : > { %v2443_v43 = vcombine.high %v2439_v60, %v2439_v60  ;;  %v2450_v18 = vrot.slane %v2439_v60, %v3675_v12  ;;  %v2316_v24 = vmul.f32 %v4093_v20, %v2277_v62  ;;  %v2088_v6 = vadd.f32 %v2079_v31, %v1852_v41 }
 0x1e8   : > { %v2315_v32 = vmul.f32 %v4093_v20, %v4340_v48  ;;  %v1853_v29 = vadd.f32 %v1844_v55, %v1617_v45  ;;  %v1382_v11 = vadd.f32 %v3985_v23, %v3952_v28  ;;  %v1383_v35 = vadd.f32 %v4000_v58, %v1147_v50 }
 0x1e9   : > { %v1610_v17 = vmul.f32 %v4107_v0, %v1577_v21  ;;  %v2457_v48 = vrot.slane %v2443_v43, %v3675_v12  ;;  %v2458_v52 = vcombine.high %v2450_v18, %v2450_v18  ;;  %v2466_v8 = vrot.slane %v2450_v18, %v3675_v12 }
 0x1ea   : > { %v2089_v33 = vadd.f32 %v2080_v27, %v1853_v29  ;;  %v2324_v60 = vadd.f32 %v2315_v32, %v2088_v6  ;;  %v1618_v55 = vadd.f32 %v1609_v54, %v1382_v11  ;;  %v1845_v45 = vmul.f32 %v4078_v13, %v3768_v53 }
 0x1eb   : > { %v1619_v62 = vadd.f32 %v1610_v17, %v1383_v35  ;;  %v2459_v28 = vcombine.high %v2457_v48, %v2457_v48  ;;  %v4115_v23 = vrot.slane %v2457_v48, %v3675_v12  ;;  %v2480_v58 = vrot.slane %v2458_v52, %v3675_v12  ;;  %v4129_v52 = vld [vmem:[%s3442_s13 + $0x40] sm:$0xff] }
 0x1ec   : > { %v2488_v21 = vcombine.high %v2466_v8, %v2466_v8  ;;  %v2325_v31 = vadd.f32 %v2316_v24, %v2089_v33  ;;  %v2509_v41 = vrot.slane %v2466_v8, %v3439_v25  ;;  %v1846_v27 = vmul.f32 %v4078_v13, %v3771_v51 }
 0x1ed   : > { %v1854_v6 = vadd.f32 %v1845_v45, %v1618_v55  ;;  %v2513_v54 = vrot.slane %v2480_v58, %v3439_v25  ;;  %v2049_v32 = vrot.slane %v2018_v36, %v3439_v25  ;;  %v2081_v53 = vmul.f32 %v4085_v14, %v2045_v19 }
 0x1ee   : > { %v4341_v50 = vcombine.high %v3823_v16, %v3823_v16  ;;  %v2551_v24 = vmul.f32 %v4129_v52, %v2509_v41  ;;  %v1855_v18 = vadd.f32 %v1846_v27, %v1619_v62  ;;  %v4342_v51 = vcombine.high %v3838_v15, %v3838_v15 }
 0x1ef   : > { %v2490_v11 = vcombine.high %v2480_v58, %v2480_v58  ;;  %v2552_v36 = vmul.f32 %v4129_v52, %v2513_v54  ;;  %v2082_v19 = vmul.f32 %v4085_v14, %v2049_v32  ;;  %v2090_v35 = vadd.f32 %v2081_v53, %v1854_v6 }
 0x1f0   : > { %v2281_v43 = vrot.slane %v4341_v50, %v3439_v25  ;;  %v2285_v29 = vrot.slane %v4342_v51, %v3439_v25  ;;  %v2560_v16 = vadd.f32 %v2551_v24, %v2324_v60  ;;  %v2517_v8 = vrot.slane %v2488_v21, %v3439_v25 }
 0x1f1   : > { %v2521_v33 = vrot.slane %v2490_v11, %v3439_v25  ;;  %v2561_v55 = vadd.f32 %v2552_v36, %v2325_v31  ;;  %v2091_v62 = vadd.f32 %v2082_v19, %v1855_v18  ;;  %v1149_v15 = vadd.f32 %v3943_v42, %v3869_v9 }
 0x1f2   : > { %v2317_v17 = vmul.f32 %v4093_v20, %v2281_v43  ;;  %v2318_v48 = vmul.f32 %v4093_v20, %v2285_v29  ;;  %v2553_v58 = vmul.f32 %v4129_v52, %v2517_v8  ;;  %v1384_v27 = vadd.f32 %v3980_v61, %v3955_v57 }
 0x1f3   : > { %v2554_v41 = vmul.f32 %v4129_v52, %v2521_v33  ;;  %v4343_v60 = vrot.slane %v4026_v7, %v3439_v25  ;;  %v3050_v6 = vpack.c.bf16 %v2561_v55, %v2560_v16  ;;  %v1385_v31 = vadd.f32 %v3993_v22, %v1149_v15 }
 0x1f4   : > { %v2326_v45 = vadd.f32 %v2317_v17, %v2090_v35  ;;  %v2327_v54 = vadd.f32 %v2318_v48, %v2091_v62  ;;  %v4344_v32 = vrot.slane %v3716_v30, %v3439_v25  ;;  %v1620_v53 = vadd.f32 %v4045_v10, %v1384_v27 }
 0x1f5   : > { %v1612_v21 = vmul.f32 %v4107_v0, %v4343_v60  ;;  %v4345_v57 = vrot.slane %v3746_v44, %v3439_v25  ;;  %v2057_v7 = vrot.slane %v4063_v56, %v3439_v25  ;;  %3051 = vmatprep.subr.bf16.mxu1 %v3050_v6  ;;  %v4346_v22 = vrot.slane %v4054_v26, %v3439_v25 }
 0x1f6   : > { %v1847_v9 = vmul.f32 %v4078_v13, %v4344_v32  ;;  %v2562_v42 = vadd.f32 %v2553_v58, %v2326_v45  ;;  %v2563_v50 = vadd.f32 %v2554_v41, %v2327_v54  ;;  %v2289_v24 = vrot.slane %v3830_v1, %v3439_v25  ;;  %3053 = vmatpush3.bf16.msra.mxu1 %v3050_v6 }
 0x1f7   : > { %v1848_v61 = vmul.f32 %v4078_v13, %v4345_v57  ;;  %v1621_v43 = vadd.f32 %v1612_v21, %v1385_v31  ;;  %v2083_v30 = vmul.f32 %v4085_v14, %v4346_v22  ;;  %v2084_v18 = vmul.f32 %v4085_v14, %v2057_v7 }
 0x1f8   : > { %v1856_v10 = vadd.f32 %v1847_v9, %v1620_v53  ;;  %v2293_v51 = vrot.slane %v3863_v37, %v3439_v25  ;;  %v2487_v29 = vrot.slane %v2459_v28, %v3675_v12  ;;  %v3054_v11 = vpack.c.bf16 %v2563_v50, %v2562_v42  ;;  %v3153_v28 = vld [vmem:[%s3442_s13 + $0x18] sm:$0xff]  ;;  %s3253_s13 = smov [#allocation3]  }
 0x1f9   : > { %v1857_v36 = vadd.f32 %v1848_v61, %v1621_v43  ;;  %v2319_v19 = vmul.f32 %v4093_v20, %v2289_v24  ;;  %v2525_v35 = vrot.slane %v4115_v23, %v3439_v25  ;;  %v915_v8 = vadd.f32 %v3876_v38, %v3758_v59  ;;  %s3158_s14 = sshll.u32 %s3253_s13, 4  ;;  %s3159_s14 = int_to_ptr.vmem [resolvable:$false] %s3158_s14 }
 0x1fa   : > { %v2092_v17 = vadd.f32 %v2083_v30, %v1856_v10  ;;  %v2320_v16 = vmul.f32 %v4093_v20, %v2293_v51  ;;  %v2529_v48 = vrot.slane %v2487_v29, %v3439_v25  ;;  %3055 = vmatprep.subr.bf16.mxu1 %v3054_v11  ;;  %v1150_v12 = vadd.f32 %v3946_v46, %v3872_v40  ;;  %s3160_s17 = scalar_lea.vmem %s3159_s14, 1024  ;;  %p3161_p4 = scmp.lt.s32.totalorder %s4257_s15, %s3159_s14 }
 0x1fb   : > { %v2093_v33 = vadd.f32 %v2084_v18, %v1857_v36  ;;  %v2555_v55 = vmul.f32 %v4129_v52, %v2525_v35  ;;  %v1378_v62 = vmul.f32 %v3153_v28, %v3990_v47  ;;  %3057 = vmatpush3.bf16.msra.mxu1 %v3054_v11  ;;  %v1151_v58 = vadd.f32 %v3959_v63, %v915_v8  ;;  %v4352_v18 = vld [vmem:[#allocation10_spill] sm:$0xff]  ;;  %p3162_p5 = scmp.lt.s32.totalorder %s3160_s17, %s3154_s26 }
 0x1fc   : > { %v2328_v45 = vadd.f32 %v2319_v19, %v2092_v17  ;;  %v2556_v15 = vmul.f32 %v4129_v52, %v2529_v48  ;;  %v1613_v41 = vmul.f32 %v4107_v0, %v4040_v39  ;;  %v1386_v38 = vadd.f32 %v3996_v5, %v1150_v12  ;;  %v4356_v17 = vld [vmem:[#allocation11_spill] sm:$0xff] }
 0x1fd   : > { %v2329_v59 = vadd.f32 %v2320_v16, %v2093_v33  ;;  %v1614_v27 = vmul.f32 %v4107_v0, %v4049_v34  ;;  %v4347_v40 = vcombine.high %v3746_v44, %v3746_v44  ;;  %v1387_v60 = vadd.f32 %v1378_v62, %v1151_v58  ;;  %v2580_v58 = vpop.permute.xlu0 %2579  ;;  %p3163_p6 = por %p3162_p5, %p3161_p4 }
 0x1fe   : > { %v2564_v47 = vadd.f32 %v2555_v55, %v2328_v45  ;;  %v1849_v21 = vmul.f32 %v4078_v13, %v3778_v3  ;;  %v4348_v39 = vcombine.high %v4054_v26, %v4054_v26  ;;  %v1622_v5 = vadd.f32 %v1613_v41, %v1386_v38 }
 0x1ff   : > { %v1829_v46 = vrot.slane %v4347_v40, %v3439_v25  ;;  %v2565_v6 = vadd.f32 %v2556_v15, %v2329_v59  ;;  %v4349_v34 = vcombine.high %v4063_v56, %v4063_v56  ;;  %v1623_v0 = vadd.f32 %v1614_v27, %v1387_v60  ;;  %v2571_v15 = vld [vmem:[%s4322_s6 + $0x10] sm:$0xff]  ;;  %p3164_p7 = pnand %p3163_p6, %p3157_p3 }
 0x200   : > { %v2061_v63 = vrot.slane %v4348_v39, %v3439_v25  ;;  %v2255_v3 = vcombine.high %v3863_v37, %v3863_v37  ;;  %v4350_v26 = vcombine.high %v3830_v1, %v3830_v1  ;;  %v1858_v42 = vadd.f32 %v1849_v21, %v1622_v5 }
 0x201   : > { %v1850_v54 = vmul.f32 %v4078_v13, %v1829_v46  ;;  %v2065_v44 = vrot.slane %v4349_v34, %v3439_v25  ;;  %v3058_v9 = vpack.c.bf16 %v2565_v6, %v2564_v47  ;;  %v2489_v57 = vcombine.high %v4115_v23, %v4115_v23  ;;  %v2590_v21 = vpop.permute.xlu0 %2589 }
 0x202   : > { %v2085_v31 = vmul.f32 %v4085_v14, %v2061_v63  ;;  %v2297_v32 = vrot.slane %v4350_v26, %v3439_v25  ;;  %v2301_v61 = vrot.slane %v2255_v3, %v3439_v25  ;;  %v2491_v50 = vcombine.high %v2487_v29, %v2487_v29 }
 0x203   : > { %v2086_v53 = vmul.f32 %v4085_v14, %v2065_v44  ;;  %v1859_v56 = vadd.f32 %v1850_v54, %v1623_v0  ;;  %3059 = vmatprep.subr.bf16.mxu1 %v3058_v9  ;;  %v2533_v43 = vrot.slane %v2489_v57, %v3439_v25  ;;  %v1388_v1 = vadd.f32 %v3929_v49, %v3911_v4  ;;  %v4354_v4 = vld [vmem:[#allocation9_spill] sm:$0xff] }
 0x204   : > { %v2321_v7 = vmul.f32 %v4093_v20, %v2297_v32  ;;  %v2094_v37 = vadd.f32 %v2085_v31, %v1858_v42  ;;  %v4351_v22 = vrot.slane %v3695_v2, %v3439_v25  ;;  %3061 = vmatpush3.bf16.msra.mxu1 %v3058_v9  ;;  %v2322_v24 = vmul.f32 %v4093_v20, %v2301_v61  ;;  %v4355_v2 = vld [vmem:[#allocation8_spill] sm:$0xff] }
 0x205   : > { %v2095_v23 = vadd.f32 %v2086_v53, %v1859_v56  ;;  %v2537_v10 = vrot.slane %v2491_v50, %v3439_v25  ;;  %v4353_v51 = vrot.slane %v4352_v18, %v3439_v25  ;;  %v2557_v36 = vmul.f32 %v4129_v52, %v2533_v43 }
 0x206   : > { %v1851_v30 = vmul.f32 %v4078_v13, %v4351_v22  ;;  %v2330_v11 = vadd.f32 %v2321_v7, %v2094_v37  ;;  %v1624_v49 = vadd.f32 %v4354_v4, %v1388_v1  ;;  %v2305_v19 = vrot.slane %v4355_v2, %v3439_v25 }
 0x207   : > { %v2087_v29 = vmul.f32 %v4085_v14, %v4353_v51  ;;  %v2331_v13 = vadd.f32 %v2322_v24, %v2095_v23  ;;  %v2558_v35 = vmul.f32 %v4129_v52, %v2537_v10  ;;  %v2541_v16 = vrot.slane %v4356_v17, %v3439_v25  ;;  %v2570_v25 = vld [vmem:[%s4322_s6 + $0x8] sm:$0xff] }
 0x208   : > { %v2566_v48 = vadd.f32 %v2557_v36, %v2330_v11  ;;  %v1860_v8 = vadd.f32 %v1851_v30, %v1624_v49  ;;  %v2323_v14 = vmul.f32 %v4093_v20, %v2305_v19  ;;  %v2572_v20 = vld [vmem:[%s4322_s6 + $0x18] sm:$0xff] }
 0x209   : > { %v2567_v33 = vadd.f32 %v2558_v35, %v2331_v13  ;;  %v2559_v12 = vmul.f32 %v4129_v52, %v2541_v16  ;;  %v2585_v52 = vpop.permute.xlu1 %2584 }
 0x20a   : > { %v2096_v55 = vadd.f32 %v2087_v29, %v1860_v8 }
 0x20b   : > { %v3062_v28 = vpack.c.bf16 %v2567_v33, %v2566_v48 }
 0x20c   : > { %v2332_v62 = vadd.f32 %v2323_v14, %v2096_v55 }
 0x20d   : > { %3063 = vmatprep.subr.bf16.mxu1 %v3062_v28  ;;  %v2595_v46 = vpop.permute.xlu1 %2594 }
 0x20e   : > { %3065 = vmatpush3.bf16.msra.mxu1 %v3062_v28  ;;  %v2568_v45 = vadd.f32 %v2559_v12, %v2332_v62 }
 0x210   : > { %2988 = vmatprep.subr.mxu1 %v2568_v45 }
 0x212   : > { %2989 = vmatpush3.msra.mxu1 %v2568_v45 }
 0x213   : > { %2991 = vmatmul.mubr.msk.f32.vlgmr.msra.gmra.mrb[4].mxu1 %vm2597_vm8, %v2570_v25 }
 0x214   : > { %2993 = vmatprep.mubr.msk.f32.mxu1 %vm2597_vm8, %v2571_v15 }
 0x217   : > { %2994 = vmatmul.mubr.msk.f32.gmra.mrb[6].mxu1 %vm2597_vm8, %v2572_v20 }
 0x2e6   : > { %v2992_v41 = vpop.f32.mrb[4].mxu1 }
 0x2e7   : > { %v2682_v59 = vadd.f32 %v2992_v41, %v2585_v52  ;;  %v2676_v38 = vpop.f32.mrb[5].mxu1 }
 0x2e8   : > { %v2677_v27 = vadd.f32 %v2676_v38, %v2580_v58 }
 0x2e9   : > { %vm2696_vm10 = vcmp.ge.f32.partialorder %v2682_v59, 0.0  ;;  %v2700_v40 = vmul.f32 0.1, %v2682_v59 }
 0x2ea   : > { %vm2695_vm11 = vcmp.ge.f32.partialorder %v2677_v27, 0.0  ;;  %v2699_v47 = vmul.f32 0.1, %v2677_v27  ;;  %v2995_v60 = vpop.f32.mrb[6].mxu1 }
 0x2eb   : > { %v2704_v39 = vsel %vm2696_vm10, %v2682_v59, %v2700_v40  ;;  %v2692_v63 = vadd.f32 %v2995_v60, %v2595_v46  ;;  %v2686_v6 = vpop.f32.mrb[7].mxu1 }
 0x2ec   : > { %2708 = vst [vmem:[%s387_s22 + $0x8] sm:$0xff] %v2704_v39  ;;  %v2703_v5 = vsel %vm2695_vm11, %v2677_v27, %v2699_v47  ;;  %v2687_v54 = vadd.f32 %v2686_v6, %v2590_v21 }
 0x2ed   : > { %2707 = vst [vmem:[%s387_s22] sm:$0xff] %v2703_v5  ;;  %vm2698_vm8 = vcmp.ge.f32.partialorder %v2692_v63, 0.0  ;;  %v2702_v34 = vmul.f32 0.1, %v2692_v63 }
 0x2ee   : > { %vm2697_vm12 = vcmp.ge.f32.partialorder %v2687_v54, 0.0  ;;  %v2701_v44 = vmul.f32 0.1, %v2687_v54 }
 0x2ef   : > { %v2706_v0 = vsel %vm2698_vm8, %v2692_v63, %v2702_v34 }
 0x2f0   : > { %2710 = vst [vmem:[%s387_s22 + $0x18] sm:$0xff] %v2706_v0  ;;  %v2705_v31 = vsel %vm2697_vm12, %v2687_v54, %v2701_v44 }
 0x2f1   : > { %2709 = vst [vmem:[%s387_s22 + $0x10] sm:$0xff] %v2705_v31 }
 0x2f2   : > { %3167 = shalt.err (!%p3164_p7)
}
 0x2f3   : > { %s3168_s21 = scalar_lea.hbm %s4262_s18, 512  ;;  %s3172_s30 = scalar_lea.hbm %s4324_s8, 2048 }
 0x2f4   : > { %p3169_p10 = scmp.ne.s32.totalorder %s4262_s18, %s3168_s21  ;;  %p3173_p13 = scmp.lt.u32.totalorder %s4262_s18, %s4324_s8 }
 0x2f5   : > { %p3174_p0 = scmp.lt.u32.totalorder %s3172_s30, %s3168_s21  ;;  %p3176_p2 = scmp.lt.u32.totalorder %s3168_s21, %s4262_s18 }
 0x2f6   : > { %p3170_p11 = pnand %p3169_p10, %p3362_p8 }
 0x2f7   : > { %p3175_p1 = por %p3174_p0, %p3173_p13 }
 0x2f8   : > { %p3171_p12 = pneg %p3170_p11 }
 0x2f9   : > { %p3177_p3 = por %p3176_p2, %p3175_p1 }
 0x2fb   : > { %p3178_p4 = pnand %p3177_p3, %p3171_p12 }
 0x2fd   : > { %3181 = shalt.err (!%p3178_p4)
}
 0x2fe   : > { %s3254_s26 = smov 128   ;;  %s3255_s14 = smov 256  }
 0x2ff   : > { %s3256_s17 = smov 8  }
 0x300   : > { %3069 = dma.vmem_to_hbm [thread:$0]  (%p3362_p8), %s4257_s15, 512, %s4262_s18, %s2712_s23, %s3254_s26, %s3255_s14, %s3256_s17  }
 0x301 PF: > { %p3075_p5 = scmp.ge.s32.totalorder %s3248_s12, 2  ;;  %s2741_s22 = sand.u32 1, %s3220_s27  }
 0x302   : > { %s2742_s21 = scalar_lea.sflag [#allocation4], %s2741_s22 }
 0x303   : > { %p3072_p6 = pnand %p3075_p5, %p3366_p9 }
 0x305   : > { %3215 = dma.done.wait (!%p3072_p6), %s2742_s21, 512  }
 0x306   : > { %3217 = vsyncadd (!%p3072_p6), %s2742_s21, 4294966784  ;;  %s21_s12 = sadd.s32 1, %s3248_s12   ;;  %s4357_s19 = sld [smem:[#allocation6_spill]] }
 0x307   : > { %p18_p7 = scmp.ge.s32.totalorder %s21_s12, 6   ;;  %s4358_s25 = sld [smem:[#allocation7_spill]] }
 0x308   : > { %s4359_s27 = smov %s3224_s28  ;;  %s4360_s28 = smov %s3228_s29 }
 0x309   : > { %s4361_s29 = smov %s3374_s24  ;;  %s4362_s30 = smov %s3240_s10 }
 0x30a   : > { %s4363_s9 = smov %s3244_s11  ;;  %20 = sbr.rel (!%p18_p7) target bundleno = 5 (0x5), region = 138 }
 0x30c   : > { %s4364_s10 = smov %s4357_s19 }
 0x30d   : > { %s4365_s11 = smov %s4358_s25 }
 0x311   :  { %2747 = vsyncpa [#allocation4], 1 }
 0x312   :  { %2749 = vsyncpa [#allocation4 + $0x1], 1 }

</bundles_post_ra>
